<compile_context>
chip_gen: v7x
topology: tpu7x:2x2x1
jax: 0.10.0
libtpu: 0.0.40
codegen_flags: <defaults>
</compile_context>

<pallas_src>
import jax
import jax.numpy as jnp
from jax.experimental import pallas as pl
from jax.experimental.pallas import tpu as pltpu

POS_NUM = 5                      # POSITIONAL_ENCODING_BASIS_NUM
HID = 32                         # N_NEURONS (class default)
OUT_DIM = 1

X_DIM, ALPHA_DIM, XCO_DIM = 1, 1, 2
RAW_DIM = X_DIM + ALPHA_DIM + XCO_DIM                  # 4  (packed raw input rows)
ENC_DIM = POS_NUM * XCO_DIM                            # 10 (rows of the sin block / cos block)
IN_DIM = RAW_DIM + 2 * ENC_DIM                         # 24 (linear1 input width)


def mlp_kernel(in_ref, w1r_ref, w1s_ref, w1c_ref, w2_ref, w3_ref, w4_ref, w5_ref, wo_ref, o_ref):
    raw = in_ref[...]                                  # (RAW_DIM, TB) f32 = [x; alpha; x_co]
    xco = raw[X_DIM + ALPHA_DIM:, :]                   # (2, TB)

    # Sublane-dense positional encoding: stack all frequency-scaled angles into one (10, TB)
    # block, then a single sin and a single cos EUP call (exact f32 math).
    angles = jnp.concatenate([xco * (2.0 ** k) for k in range(POS_NUM)], axis=0)   # (10, TB)
    sin_b = jnp.sin(angles).astype(jnp.bfloat16)
    cos_b = jnp.cos(angles).astype(jnp.bfloat16)
    raw_b = raw.astype(jnp.bfloat16)

    def silu(h):
        # Single-EUP SiLU: h * sigmoid(h) == 0.5 * h * (tanh(h/2) + 1).
        # tanh is a native EUP op; the extra muls/adds ride the slack VALU slots.
        return 0.5 * h * (jnp.tanh(0.5 * h) + 1.0)

    # linear1 as three column-group dots (no in-kernel feat concatenate / sublane shuffle).
    h = jnp.dot(w1r_ref[...], raw_b, preferred_element_type=jnp.float32)
    h += jnp.dot(w1s_ref[...], sin_b, preferred_element_type=jnp.float32)
    h += jnp.dot(w1c_ref[...], cos_b, preferred_element_type=jnp.float32)
    h = silu(h).astype(jnp.bfloat16)

    for w_ref in (w2_ref, w3_ref, w4_ref, w5_ref):     # unrolled at trace time
        h = silu(jnp.dot(w_ref[...], h, preferred_element_type=jnp.float32)).astype(jnp.bfloat16)

    o_ref[...] = jnp.dot(wo_ref[...], h,
                         preferred_element_type=jnp.float32).astype(o_ref.dtype)


def _round_up(a, b):
    return pl.cdiv(a, b) * b


def _split_w1(w1):
    """Split torch linear1 weight (HID, 24) into (raw, sin, cos) column groups.

    Torch feat column order is [x, alpha, x_co(2), then per k: sin(2^k x_co)(2), cos(2^k x_co)(2)].
    """
    sin_cols = [RAW_DIM + 2 * XCO_DIM * k + j for k in range(POS_NUM) for j in range(XCO_DIM)]
    cos_cols = [RAW_DIM + 2 * XCO_DIM * k + XCO_DIM + j for k in range(POS_NUM) for j in range(XCO_DIM)]
    return (w1[:, :RAW_DIM], w1[:, jnp.array(sin_cols)], w1[:, jnp.array(cos_cols)])


def nn_cond_pos_spherical_simpler(x, alpha, x_co, w1, w2, w3, w4, w5, wo, *, tb=4096):
    """x:(B,1) alpha:(B,1) x_co:(B,2); weights in torch (out,in) layout. Returns (B,1) float32."""
    B = x.shape[0]
    assert x.shape[1] == X_DIM and alpha.shape[1] == ALPHA_DIM and x_co.shape[1] == XCO_DIM

    # Batch tile: always a multiple of 128 (lane-dense, unmasked output stores); keep the 1-D grid
    # to >= 2 steps whenever B > 128 so v7x's second TensorCore is not idle.
    tb = max(128, _round_up(int(tb), 128))
    two_step_cap = _round_up(pl.cdiv(B, 2), 128)
    tb = max(128, min(tb, two_step_cap))
    B_pad = _round_up(B, tb)

    # Wrapper-side layout plumbing: pack + pad + transpose so the batch lives on lanes.
    raw = jnp.concatenate([x, alpha, x_co], axis=-1)             # (B, 4)
    raw = jnp.pad(raw, ((0, B_pad - B), (0, 0)))                 # (B_pad, 4)
    raw_t = raw.T.astype(jnp.float32)                            # (4, B_pad)

    # Weights: split linear1 into column groups and pre-cast everything to bf16 (full-rate MXU).
    w1r, w1s, w1c = _split_w1(w1)
    bf = jnp.bfloat16
    w1r, w1s, w1c = w1r.astype(bf), w1s.astype(bf), w1c.astype(bf)
    w2b, w3b, w4b, w5b, wob = (w.astype(bf) for w in (w2, w3, w4, w5, wo))

    full = lambda i: (0, 0)
    col = lambda i: (0, i)

    out_t = pl.pallas_call(
        mlp_kernel,
        out_shape=jax.ShapeDtypeStruct((OUT_DIM, B_pad), jnp.float32),
        grid_spec=pltpu.PrefetchScalarGridSpec(
            num_scalar_prefetch=0,
            grid=(B_pad // tb,),
            in_specs=[
                pl.BlockSpec((RAW_DIM, tb), col),        # packed [x; alpha; x_co], one DMA/step
                pl.BlockSpec((HID, RAW_DIM), full),      # linear1 raw columns   (32, 4)
                pl.BlockSpec((HID, ENC_DIM), full),      # linear1 sin columns   (32, 10)
                pl.BlockSpec((HID, ENC_DIM), full),      # linear1 cos columns   (32, 10)
                pl.BlockSpec((HID, HID), full),          # linear2
                pl.BlockSpec((HID, HID), full),          # linear3
                pl.BlockSpec((HID, HID), full),          # linear4
                pl.BlockSpec((HID, HID), full),          # linear5
                pl.BlockSpec((OUT_DIM, HID), full),      # output weight (1, 32)
            ],
            out_specs=pl.BlockSpec((OUT_DIM, tb), col),  # lane-dense (1, TB) output tile
        ),
        compiler_params=pltpu.CompilerParams(dimension_semantics=("parallel",)),
    )(raw_t, w1r, w1s, w1c, w2b, w3b, w4b, w5b, wob)

    return out_t.T[:B]                                           # (B, OUT_DIM)


def reference(x, alpha, x_co, w1, w2, w3, w4, w5, wo):
    # Pure-JAX f32 transcription of the PyTorch forward (weights in torch (out,in) layout).
    enc = [x_co]
    for k in range(POS_NUM):
        f = 2.0 ** k
        enc.append(jnp.sin(x_co * f))
        enc.append(jnp.cos(x_co * f))
    feat = jnp.concatenate([x, alpha] + enc, axis=-1)            # (B, 24)
    silu = lambda h: h * jax.nn.sigmoid(h)
    h = silu(feat @ w1.T)
    h = silu(h @ w2.T)
    h = silu(h @ w3.T)
    h = silu(h @ w4.T)
    h = silu(h @ w5.T)
    return h @ wo.T


if __name__ == "__main__":
    key = jax.random.PRNGKey(0)
    kx, ka, kc, k1, k2, k3, k4, k5, ko = jax.random.split(key, 9)

    # B deliberately not a multiple of 128: exercises padding/tail handling and (via the
    # two-step cap) a 2-step grid, so the 'parallel' multi-step pipeline path is tested.
    B = 300
    x = jax.random.normal(kx, (B, X_DIM), jnp.float32)
    alpha = jax.random.normal(ka, (B, ALPHA_DIM), jnp.float32)
    x_co = jax.random.normal(kc, (B, XCO_DIM), jnp.float32)

    # Deterministic weight init (Linear, bias=False), stored torch-style as (out, in).
    s1 = 1.0 / jnp.sqrt(jnp.float32(IN_DIM))
    s2 = 1.0 / jnp.sqrt(jnp.float32(HID))
    w1 = jax.random.uniform(k1, (HID, IN_DIM), jnp.float32, -s1, s1)
    w2 = jax.random.uniform(k2, (HID, HID), jnp.float32, -s2, s2)
    w3 = jax.random.uniform(k3, (HID, HID), jnp.float32, -s2, s2)
    w4 = jax.random.uniform(k4, (HID, HID), jnp.float32, -s2, s2)
    w5 = jax.random.uniform(k5, (HID, HID), jnp.float32, -s2, s2)
    wo = jax.random.uniform(ko, (OUT_DIM, HID), jnp.float32, -s2, s2)

    out = nn_cond_pos_spherical_simpler(x, alpha, x_co, w1, w2, w3, w4, w5, wo)
    out = jax.block_until_ready(out)

    ref = reference(x, alpha, x_co, w1, w2, w3, w4, w5, wo)
    assert out.shape == (B, OUT_DIM)
    # Tolerance covers only the bf16 MXU operands (SiLU / posenc math is exact f32 now).
    assert jnp.allclose(out, ref, atol=2e-2, rtol=2e-2), "mismatch vs pure-JAX reference"
    print("KERNEL_OK")
</pallas_src>

<mosaic_0001>
module attributes {stable_mosaic.version = 11 : i64} {
  func.func @mlp_kernel(%arg0: i32, %arg1: memref<4x256xf32, #tpu.memory_space<vmem>>, %arg2: memref<32x4xbf16, #tpu.memory_space<vmem>>, %arg3: memref<32x10xbf16, #tpu.memory_space<vmem>>, %arg4: memref<32x10xbf16, #tpu.memory_space<vmem>>, %arg5: memref<32x32xbf16, #tpu.memory_space<vmem>>, %arg6: memref<32x32xbf16, #tpu.memory_space<vmem>>, %arg7: memref<32x32xbf16, #tpu.memory_space<vmem>>, %arg8: memref<32x32xbf16, #tpu.memory_space<vmem>>, %arg9: memref<1x32xbf16, #tpu.memory_space<vmem>>, %arg10: memref<1x256xf32, #tpu.memory_space<vmem>>) attributes {dimension_semantics = [#tpu.dimension_semantics<parallel>], iteration_bounds = array<i64: 2>, scalar_prefetch = 0 : i64, scratch_operands = 0 : i64, tpu.core_type = #tpu.core_type<tc>, window_params = [{transform_indices = @transform_0, window_bounds = array<i64: 4, 256>}, {pipeline_mode = #tpu.pipeline_mode<synchronous>, transform_indices = @transform_1, window_bounds = array<i64: 32, 4>}, {pipeline_mode = #tpu.pipeline_mode<synchronous>, transform_indices = @transform_2, window_bounds = array<i64: 32, 10>}, {pipeline_mode = #tpu.pipeline_mode<synchronous>, transform_indices = @transform_3, window_bounds = array<i64: 32, 10>}, {pipeline_mode = #tpu.pipeline_mode<synchronous>, transform_indices = @transform_4, window_bounds = array<i64: 32, 32>}, {pipeline_mode = #tpu.pipeline_mode<synchronous>, transform_indices = @transform_5, window_bounds = array<i64: 32, 32>}, {pipeline_mode = #tpu.pipeline_mode<synchronous>, transform_indices = @transform_6, window_bounds = array<i64: 32, 32>}, {pipeline_mode = #tpu.pipeline_mode<synchronous>, transform_indices = @transform_7, window_bounds = array<i64: 32, 32>}, {pipeline_mode = #tpu.pipeline_mode<synchronous>, transform_indices = @transform_8, window_bounds = array<i64: 1, 32>}, {transform_indices = @transform_9, window_bounds = array<i64: 1, 256>}]} {
    %c0 = arith.constant 0 : index
    %c0_0 = arith.constant 0 : index
    %0 = vector.load %arg1[%c0, %c0_0] : memref<4x256xf32, #tpu.memory_space<vmem>>, vector<4x256xf32>
    %1 = vector.extract_strided_slice %0 {offsets = [2, 0], sizes = [2, 256], strides = [1, 1]} : vector<4x256xf32> to vector<2x256xf32>
    %cst = arith.constant 1.000000e+00 : f32
    %2 = vector.broadcast %cst : f32 to vector<2x256xf32>
    %3 = arith.mulf %1, %2 : vector<2x256xf32>
    %cst_1 = arith.constant 2.000000e+00 : f32
    %4 = vector.broadcast %cst_1 : f32 to vector<2x256xf32>
    %5 = arith.mulf %1, %4 : vector<2x256xf32>
    %cst_2 = arith.constant 4.000000e+00 : f32
    %6 = vector.broadcast %cst_2 : f32 to vector<2x256xf32>
    %7 = arith.mulf %1, %6 : vector<2x256xf32>
    %cst_3 = arith.constant 8.000000e+00 : f32
    %8 = vector.broadcast %cst_3 : f32 to vector<2x256xf32>
    %9 = arith.mulf %1, %8 : vector<2x256xf32>
    %cst_4 = arith.constant 1.600000e+01 : f32
    %10 = vector.broadcast %cst_4 : f32 to vector<2x256xf32>
    %11 = arith.mulf %1, %10 : vector<2x256xf32>
    %12 = tpu.concatenate %3, %5, %7, %9, %11 in 0 : vector<2x256xf32>, vector<2x256xf32>, vector<2x256xf32>, vector<2x256xf32>, vector<2x256xf32> -> vector<10x256xf32>
    %13 = math.sin %12 : vector<10x256xf32>
    %14 = arith.truncf %13 : vector<10x256xf32> to vector<10x256xbf16>
    %15 = math.cos %12 : vector<10x256xf32>
    %16 = arith.truncf %15 : vector<10x256xf32> to vector<10x256xbf16>
    %17 = arith.truncf %0 : vector<4x256xf32> to vector<4x256xbf16>
    %c0_5 = arith.constant 0 : index
    %c0_6 = arith.constant 0 : index
    %18 = vector.load %arg2[%c0_5, %c0_6] : memref<32x4xbf16, #tpu.memory_space<vmem>>, vector<32x4xbf16>
    %cst_7 = arith.constant dense<0.000000e+00> : vector<32x256xf32>
    %19 = tpu.matmul %18, %17, %cst_7 {dimension_numbers = #tpu.dot_dimension_numbers<[1], [0], [0], [1], [0, 0, 1, 1], [], []>} : vector<32x4xbf16>, vector<4x256xbf16>, vector<32x256xf32> -> vector<32x256xf32>
    %c0_8 = arith.constant 0 : index
    %c0_9 = arith.constant 0 : index
    %20 = vector.load %arg3[%c0_8, %c0_9] : memref<32x10xbf16, #tpu.memory_space<vmem>>, vector<32x10xbf16>
    %cst_10 = arith.constant dense<0.000000e+00> : vector<32x256xf32>
    %21 = tpu.matmul %20, %14, %cst_10 {dimension_numbers = #tpu.dot_dimension_numbers<[1], [0], [0], [1], [0, 0, 1, 1], [], []>} : vector<32x10xbf16>, vector<10x256xbf16>, vector<32x256xf32> -> vector<32x256xf32>
    %22 = arith.addf %19, %21 : vector<32x256xf32>
    %c0_11 = arith.constant 0 : index
    %c0_12 = arith.constant 0 : index
    %23 = vector.load %arg4[%c0_11, %c0_12] : memref<32x10xbf16, #tpu.memory_space<vmem>>, vector<32x10xbf16>
    %cst_13 = arith.constant dense<0.000000e+00> : vector<32x256xf32>
    %24 = tpu.matmul %23, %16, %cst_13 {dimension_numbers = #tpu.dot_dimension_numbers<[1], [0], [0], [1], [0, 0, 1, 1], [], []>} : vector<32x10xbf16>, vector<10x256xbf16>, vector<32x256xf32> -> vector<32x256xf32>
    %25 = arith.addf %22, %24 : vector<32x256xf32>
    %cst_14 = arith.constant 5.000000e-01 : f32
    %26 = vector.broadcast %cst_14 : f32 to vector<32x256xf32>
    %27 = arith.mulf %26, %25 : vector<32x256xf32>
    %cst_15 = arith.constant 5.000000e-01 : f32
    %28 = vector.broadcast %cst_15 : f32 to vector<32x256xf32>
    %29 = arith.mulf %28, %25 : vector<32x256xf32>
    %30 = math.tanh %29 : vector<32x256xf32>
    %cst_16 = arith.constant 1.000000e+00 : f32
    %31 = vector.broadcast %cst_16 : f32 to vector<32x256xf32>
    %32 = arith.addf %30, %31 : vector<32x256xf32>
    %33 = arith.mulf %27, %32 : vector<32x256xf32>
    %34 = arith.truncf %33 : vector<32x256xf32> to vector<32x256xbf16>
    %c0_17 = arith.constant 0 : index
    %c0_18 = arith.constant 0 : index
    %35 = vector.load %arg5[%c0_17, %c0_18] : memref<32x32xbf16, #tpu.memory_space<vmem>>, vector<32x32xbf16>
    %cst_19 = arith.constant dense<0.000000e+00> : vector<32x256xf32>
    %36 = tpu.matmul %35, %34, %cst_19 {dimension_numbers = #tpu.dot_dimension_numbers<[1], [0], [0], [1], [0, 0, 1, 1], [], []>} : vector<32x32xbf16>, vector<32x256xbf16>, vector<32x256xf32> -> vector<32x256xf32>
    %cst_20 = arith.constant 5.000000e-01 : f32
    %37 = vector.broadcast %cst_20 : f32 to vector<32x256xf32>
    %38 = arith.mulf %37, %36 : vector<32x256xf32>
    %cst_21 = arith.constant 5.000000e-01 : f32
    %39 = vector.broadcast %cst_21 : f32 to vector<32x256xf32>
    %40 = arith.mulf %39, %36 : vector<32x256xf32>
    %41 = math.tanh %40 : vector<32x256xf32>
    %cst_22 = arith.constant 1.000000e+00 : f32
    %42 = vector.broadcast %cst_22 : f32 to vector<32x256xf32>
    %43 = arith.addf %41, %42 : vector<32x256xf32>
    %44 = arith.mulf %38, %43 : vector<32x256xf32>
    %45 = arith.truncf %44 : vector<32x256xf32> to vector<32x256xbf16>
    %c0_23 = arith.constant 0 : index
    %c0_24 = arith.constant 0 : index
    %46 = vector.load %arg6[%c0_23, %c0_24] : memref<32x32xbf16, #tpu.memory_space<vmem>>, vector<32x32xbf16>
    %cst_25 = arith.constant dense<0.000000e+00> : vector<32x256xf32>
    %47 = tpu.matmul %46, %45, %cst_25 {dimension_numbers = #tpu.dot_dimension_numbers<[1], [0], [0], [1], [0, 0, 1, 1], [], []>} : vector<32x32xbf16>, vector<32x256xbf16>, vector<32x256xf32> -> vector<32x256xf32>
    %cst_26 = arith.constant 5.000000e-01 : f32
    %48 = vector.broadcast %cst_26 : f32 to vector<32x256xf32>
    %49 = arith.mulf %48, %47 : vector<32x256xf32>
    %cst_27 = arith.constant 5.000000e-01 : f32
    %50 = vector.broadcast %cst_27 : f32 to vector<32x256xf32>
    %51 = arith.mulf %50, %47 : vector<32x256xf32>
    %52 = math.tanh %51 : vector<32x256xf32>
    %cst_28 = arith.constant 1.000000e+00 : f32
    %53 = vector.broadcast %cst_28 : f32 to vector<32x256xf32>
    %54 = arith.addf %52, %53 : vector<32x256xf32>
    %55 = arith.mulf %49, %54 : vector<32x256xf32>
    %56 = arith.truncf %55 : vector<32x256xf32> to vector<32x256xbf16>
    %c0_29 = arith.constant 0 : index
    %c0_30 = arith.constant 0 : index
    %57 = vector.load %arg7[%c0_29, %c0_30] : memref<32x32xbf16, #tpu.memory_space<vmem>>, vector<32x32xbf16>
    %cst_31 = arith.constant dense<0.000000e+00> : vector<32x256xf32>
    %58 = tpu.matmul %57, %56, %cst_31 {dimension_numbers = #tpu.dot_dimension_numbers<[1], [0], [0], [1], [0, 0, 1, 1], [], []>} : vector<32x32xbf16>, vector<32x256xbf16>, vector<32x256xf32> -> vector<32x256xf32>
    %cst_32 = arith.constant 5.000000e-01 : f32
    %59 = vector.broadcast %cst_32 : f32 to vector<32x256xf32>
    %60 = arith.mulf %59, %58 : vector<32x256xf32>
    %cst_33 = arith.constant 5.000000e-01 : f32
    %61 = vector.broadcast %cst_33 : f32 to vector<32x256xf32>
    %62 = arith.mulf %61, %58 : vector<32x256xf32>
    %63 = math.tanh %62 : vector<32x256xf32>
    %cst_34 = arith.constant 1.000000e+00 : f32
    %64 = vector.broadcast %cst_34 : f32 to vector<32x256xf32>
    %65 = arith.addf %63, %64 : vector<32x256xf32>
    %66 = arith.mulf %60, %65 : vector<32x256xf32>
    %67 = arith.truncf %66 : vector<32x256xf32> to vector<32x256xbf16>
    %c0_35 = arith.constant 0 : index
    %c0_36 = arith.constant 0 : index
    %68 = vector.load %arg8[%c0_35, %c0_36] : memref<32x32xbf16, #tpu.memory_space<vmem>>, vector<32x32xbf16>
    %cst_37 = arith.constant dense<0.000000e+00> : vector<32x256xf32>
    %69 = tpu.matmul %68, %67, %cst_37 {dimension_numbers = #tpu.dot_dimension_numbers<[1], [0], [0], [1], [0, 0, 1, 1], [], []>} : vector<32x32xbf16>, vector<32x256xbf16>, vector<32x256xf32> -> vector<32x256xf32>
    %cst_38 = arith.constant 5.000000e-01 : f32
    %70 = vector.broadcast %cst_38 : f32 to vector<32x256xf32>
    %71 = arith.mulf %70, %69 : vector<32x256xf32>
    %cst_39 = arith.constant 5.000000e-01 : f32
    %72 = vector.broadcast %cst_39 : f32 to vector<32x256xf32>
    %73 = arith.mulf %72, %69 : vector<32x256xf32>
    %74 = math.tanh %73 : vector<32x256xf32>
    %cst_40 = arith.constant 1.000000e+00 : f32
    %75 = vector.broadcast %cst_40 : f32 to vector<32x256xf32>
    %76 = arith.addf %74, %75 : vector<32x256xf32>
    %77 = arith.mulf %71, %76 : vector<32x256xf32>
    %78 = arith.truncf %77 : vector<32x256xf32> to vector<32x256xbf16>
    %c0_41 = arith.constant 0 : index
    %c0_42 = arith.constant 0 : index
    %79 = vector.load %arg9[%c0_41, %c0_42] : memref<1x32xbf16, #tpu.memory_space<vmem>>, vector<1x32xbf16>
    %cst_43 = arith.constant dense<0.000000e+00> : vector<1x256xf32>
    %80 = tpu.matmul %79, %78, %cst_43 {dimension_numbers = #tpu.dot_dimension_numbers<[1], [0], [0], [1], [0, 0, 1, 1], [], []>} : vector<1x32xbf16>, vector<32x256xbf16>, vector<1x256xf32> -> vector<1x256xf32>
    %c0_44 = arith.constant 0 : index
    %c0_45 = arith.constant 0 : index
    %81 = vector.load %arg10[%c0_44, %c0_45] : memref<1x256xf32, #tpu.memory_space<vmem>>, vector<1x256xf32>
    tpu.vector_store %arg10[%c0_44, %c0_45], %80 {strides = array<i32>} : memref<1x256xf32, #tpu.memory_space<vmem>>, vector<1x256xf32>,
    return
  }
  func.func @transform_0(%arg0: i32) -> (i32, i32) {
    %c0_i32 = arith.constant 0 : i32
    %c0_i32_0 = arith.constant 0 : i32
    return %c0_i32, %arg0 : i32, i32
  }
  func.func @transform_1(%arg0: i32) -> (i32, i32) {
    %c0_i32 = arith.constant 0 : i32
    %c0_i32_0 = arith.constant 0 : i32
    %c0_i32_1 = arith.constant 0 : i32
    return %c0_i32, %c0_i32_0 : i32, i32
  }
  func.func @transform_2(%arg0: i32) -> (i32, i32) {
    %c0_i32 = arith.constant 0 : i32
    %c0_i32_0 = arith.constant 0 : i32
    %c0_i32_1 = arith.constant 0 : i32
    return %c0_i32, %c0_i32_0 : i32, i32
  }
  func.func @transform_3(%arg0: i32) -> (i32, i32) {
    %c0_i32 = arith.constant 0 : i32
    %c0_i32_0 = arith.constant 0 : i32
    %c0_i32_1 = arith.constant 0 : i32
    return %c0_i32, %c0_i32_0 : i32, i32
  }
  func.func @transform_4(%arg0: i32) -> (i32, i32) {
    %c0_i32 = arith.constant 0 : i32
    %c0_i32_0 = arith.constant 0 : i32
    %c0_i32_1 = arith.constant 0 : i32
    return %c0_i32, %c0_i32_0 : i32, i32
  }
  func.func @transform_5(%arg0: i32) -> (i32, i32) {
    %c0_i32 = arith.constant 0 : i32
    %c0_i32_0 = arith.constant 0 : i32
    %c0_i32_1 = arith.constant 0 : i32
    return %c0_i32, %c0_i32_0 : i32, i32
  }
  func.func @transform_6(%arg0: i32) -> (i32, i32) {
    %c0_i32 = arith.constant 0 : i32
    %c0_i32_0 = arith.constant 0 : i32
    %c0_i32_1 = arith.constant 0 : i32
    return %c0_i32, %c0_i32_0 : i32, i32
  }
  func.func @transform_7(%arg0: i32) -> (i32, i32) {
    %c0_i32 = arith.constant 0 : i32
    %c0_i32_0 = arith.constant 0 : i32
    %c0_i32_1 = arith.constant 0 : i32
    return %c0_i32, %c0_i32_0 : i32, i32
  }
  func.func @transform_8(%arg0: i32) -> (i32, i32) {
    %c0_i32 = arith.constant 0 : i32
    %c0_i32_0 = arith.constant 0 : i32
    %c0_i32_1 = arith.constant 0 : i32
    return %c0_i32, %c0_i32_0 : i32, i32
  }
  func.func @transform_9(%arg0: i32) -> (i32, i32) {
    %c0_i32 = arith.constant 0 : i32
    %c0_i32_0 = arith.constant 0 : i32
    return %c0_i32, %arg0 : i32, i32
  }
}

</mosaic_0001>

<bundles_post_ra>
// kernel: tpu_custom_call.1
= control target key start
LH: loop header
LB: loop body
LE: loop exit
PB: predicated region body
PF: predicated region fallthrough
CT: control target
= control target key end

     0   :  { %14 = vsyncpa [#allocation3], 0  ;;  %s3022_s0 = inlined_call_operand.vmem [shape: f32[4,512], index: 0, kind: input, shape index: {}]   ;;  %s3023_s1 = inlined_call_operand.vmem [shape: bf16[32,4], index: 1, kind: input, shape index: {}]   ;;  %s3024_s2 = inlined_call_operand.vmem [shape: bf16[32,10], index: 2, kind: input, shape index: {}]   ;;  %s3025_s3 = inlined_call_operand.vmem [shape: bf16[32,10], index: 3, kind: input, shape index: {}]   ;;  %s3026_s4 = inlined_call_operand.vmem [shape: bf16[32,32], index: 4, kind: input, shape index: {}]   ;;  %s3027_s5 = inlined_call_operand.vmem [shape: bf16[32,32], index: 5, kind: input, shape index: {}]   ;;  %s3028_s6 = inlined_call_operand.vmem [shape: bf16[32,32], index: 6, kind: input, shape index: {}]   ;;  %s3029_s7 = inlined_call_operand.vmem [shape: bf16[32,32], index: 7, kind: input, shape index: {}]   ;;  %s3030_s8 = inlined_call_operand.vmem [shape: bf16[1,32], index: 8, kind: input, shape index: {}]   ;;  %s3031_s9 = inlined_call_operand.hbm [shape: f32[1,512], index: 9, kind: output, shape index: {}]  }
   0x1   :  { %16 = vsyncpa [#allocation3 + $0x1], 0  ;;  %s2461_s30 = smov 0   ;;  %s2463_s10 = smov 0  }
   0x2   :  { %s2465_s11 = smov 0   ;;  %s2467_s12 = smov 0  }
   0x3 LB: > { %s2482_s13 = sadd.s32 4294967295, %s2400_s12   ;;  %s2071_s14 = sadd.s32 4294967294, %s2400_s12   ;;  %s2400_s12 = sphi %s2467_s12, %s3043_s12   ;;  %s2396_s11 = sphi %s2465_s11, %s3042_s11   ;;  %s2392_s10 = sphi %s2463_s10, %s3041_s10   ;;  %s2388_s30 = sphi %s2461_s30, %s3040_s30  }
   0x4   : > { %s2486_s15 = sadd.s32 1, %s2400_s12   ;;  %s223_s16 = sadd.s32 1, %s2396_s11 }
   0x5   : > { %s220_s17 = ssub.s32 %s2400_s12, %s2486_s15  ;;  %p233_p0 = scmp.ne.s32.totalorder %s2396_s11, %s2392_s10 }
   0x6   : > { %p221_p1 = scmp.eq.s32.totalorder %s220_s17, 0  ;;  %p234_p2 = scmp.eq.s32.totalorder %s2482_s13, 1 }
   0x7   : > { %p239_p3 = scmp.ne.s32.totalorder %s2392_s10, %s2388_s30  ;;  %p240_p4 = scmp.eq.s32.totalorder %s2071_s14, 1 }
   0x8   : > { %s2497_s18 = scalar_select %p221_p1, %s2396_s11, %s223_s16  }
   0x9   : > { %p2499_p5 = por %p234_p2, %p233_p0  ;;  %p2503_p6 = por %p240_p4, %p239_p3 }
   0xa   : > { %p2074_p7 = scmp.ge.s32.totalorder %s2400_s12, 1  ;;  %p291_p8 = scmp.lt.s32.totalorder %s2400_s12, 3 }
   0xc   : > { %p292_p9 = pnand %p2074_p7, %p291_p8 }
   0xd   : > { %s2076_s21 = sshll.u32 (!%p292_p9), %s2482_s13, 1  ;;  %vm364_vm0 = vcmask (!%p292_p9), 1041408   ;;  %vm367_vm1 = vcmask (!%p292_p9), 1043456   ;;  %vm370_vm2 = vcmask (!%p292_p9), 1045504   ;;  %v2402_v49 = vmov (!%p292_p9), 683565275  }
   0xe   : > { %295 = sbr.rel (%p292_p9) target bundleno = 1674 (0x68a), region = 56  ;;  %p328_p10 = scmp.lt.s32.totalorder (!%p292_p9), %s2076_s21, 3  ;;  %v2403_v51 = vmov (!%p292_p9), 2475754826   ;;  %v2404_v56 = vmov (!%p292_p9), 2131351028  }
   0xf   : > { %v2405_v58 = vmov (!%p292_p9), 2102212464   ;;  %v2406_v60 = vmov (!%p292_p9), 920167782   ;;  %s324_s17 = sand.u32 (!%p292_p9), 1, %s2392_s10  }
  0x10   : > { %s1998_s28 = scalar_lea.sflag (!%p292_p9), [#allocation3], %s324_s17 }
  0x15   : > { %s3045_s21 = smov (!%p328_p10, %s2076_s21), 3 }
  0x16   : > { %s2077_s22 = sshll.u32 %s3045_s21, 2  ;;  %s2075_s21 = sshll.u32 %s324_s17, 1 }
  0x17   : > { %s331_s25 = scalar_lea.vmem %s3022_s0, %s2077_s22  ;;  %s2147_s22 = sshll.u32 %s2482_s13, 5 }
  0x18   : > { %v2513_v0 = vld [vmem:[%s331_s25] sm:$0xff]  ;;  %s326_s23 = scalar_lea.vmem [#allocation2], %s2075_s21  ;;  %s2980_s27 = scalar_lea.hbm %s3031_s9, %s2147_s22 }
  0x19   : > { %v336_v1 = vmul.f32 2.0, %v2513_v0  ;;  %v337_v2 = vmul.f32 4.0, %v2513_v0  ;;  %v338_v3 = vmul.f32 8.0, %v2513_v0  ;;  %v2519_v4 = vmul.f32 16.0, %v2513_v0  ;;  %s2012_s24 = sshll.u32 %s326_s23, 4  ;;  %s2410_s13 = smov [#allocation2]   ;;  %s2982_s24 = int_to_ptr.vmem [resolvable:$true] %s2012_s24 }
  0x1a   : > { %v2523_v5 = vcombine.high %v2513_v0, %v2513_v0  ;;  %v342_v6 = vrot.slane %v2513_v0, 2  ;;  %s2338_s29 = scalar_lea.vmem %s2982_s24, 32  ;;  %s2342_s14 = sshll.u32 %s2410_s13, 4  ;;  %s2343_s14 = int_to_ptr.vmem [resolvable:$false] %s2342_s14 }
  0x1b   : > { %v347_v7 = vcombine.high %v336_v1, %v336_v1  ;;  %v350_v8 = vcombine.high %v337_v2, %v337_v2  ;;  %v359_v9 = vcombine.high %v2519_v4, %v2519_v4  ;;  %v351_v10 = vrot.slane %v337_v2, 6  ;;  %p2339_p11 = scmp.ne.s32.totalorder %s2982_s24, %s2338_s29  ;;  %s2344_s16 = scalar_lea.vmem %s2343_s14, 64 }
  0x1c   : > { %v343_v11 = vrot.slane %v2523_v5, 2  ;;  %v356_v12 = vcombine.low %v338_v3, %v338_v3  ;;  %v365_v13 = vsel %vm364_vm0, %v342_v6, %v336_v1  ;;  %p2345_p0 = scmp.lt.s32.totalorder %s2982_s24, %s2343_s14  ;;  %p2346_p1 = scmp.lt.s32.totalorder %s2344_s16, %s2338_s29 }
  0x1d   : > { %v352_v14 = vrot.slane %v350_v8, 6  ;;  %v2530_v15 = vrot.slane %v359_v9, 2  ;;  %v368_v16 = vsel %vm367_vm1, %v365_v13, %v351_v10  ;;  %p2340_p12 = pnand %p2339_p11, %p2499_p5 }
  0x1e   : > { %v366_v17 = vsel %vm364_vm0, %v343_v11, %v347_v7  ;;  %v2535_v21 = vsel %vm370_vm2, %v368_v16, %v356_v12  ;;  %v2407_v7 = vmov 1326507024   ;;  %p2347_p2 = por %p2346_p1, %p2345_p0 }
  0x1f   : > { %v369_v18 = vsel %vm367_vm1, %v366_v17, %v352_v14  ;;  %v685_v19 = vand.u32 2147483647, %v2530_v15  ;;  %v688_v20 = vand.u32 2139095040, %v2530_v15  ;;  %v376_v26 = vand.u32 2139095040, %v2535_v21  ;;  %p2341_p13 = pneg %p2340_p12 }
  0x20   : > { %v2537_v22 = vsel %vm370_vm2, %v369_v18, %v338_v3  ;;  %v373_v41 = vand.u32 2147483647, %v2535_v21 }
  0x21   : > { %v477_v23 = vand.u32 2147483647, %v2537_v22  ;;  %v480_v24 = vand.u32 2139095040, %v2537_v22  ;;  %v689_v25 = vshrl.u32 %v688_v20, 23  ;;  %v692_v29 = vand.u32 8388607, %v685_v19  ;;  %p2348_p3 = pnand %p2347_p2, %p2341_p13 }
  0x22   : > { %v377_v31 = vshrl.u32 %v376_v26, 23 }
  0x23   : > { %v481_v27 = vshrl.u32 %v480_v24, 23  ;;  %v484_v28 = vand.u32 8388607, %v477_v23  ;;  %v2090_v30 = vadd.s32 4294967169, %v689_v25  ;;  %v693_v37 = vor.u32 8388608, %v692_v29 }
  0x24   : > { %v2078_v34 = vadd.s32 4294967169, %v377_v31 }
  0x25   : > { %v2082_v32 = vadd.s32 4294967169, %v481_v27  ;;  %v695_v33 = vadd.s32 1, %v2090_v30  ;;  %v485_v35 = vor.u32 8388608, %v484_v28  ;;  %v2553_v46 = vshll.u32 %v693_v37, 8 }
  0x26   : > { %v2549_v42 = vadd.s32 1, %v2078_v34 }
  0x27   : > { %v487_v36 = vadd.s32 1, %v2082_v32  ;;  %vm696_vm3 = vcmp.gt.s32.totalorder %v695_v33, 0  ;;  %v2551_v45 = vshll.u32 %v485_v35, 8 }
  0x28   : > { %v697_v38 = vsel %vm696_vm3, %v695_v33, 0  ;;  %vm384_vm6 = vcmp.gt.s32.totalorder %v2549_v42, 0 }
  0x29   : > { %vm488_vm4 = vcmp.gt.s32.totalorder %v487_v36, 0  ;;  %v2546_v40 = vand.u32 31, %v697_v38  ;;  %v2555_v47 = vshrl.u32 %v697_v38, 5 }
  0x2a   : > { %v489_v39 = vsel %vm488_vm4, %v487_v36, 0 }
  0x2b   : > { %v490_v43 = vshrl.u32 %v489_v39, 5  ;;  %v491_v44 = vand.u32 31, %v489_v39  ;;  %v700_v48 = vsub.s32 32, %v2546_v40  ;;  %v702_v50 = vshll.u32 %v2402_v49, %v2546_v40 }
  0x2c   : > { %v705_v52 = vshll.u32 %v2403_v51, %v2546_v40  ;;  %v708_v62 = vshll.u32 %v2404_v56, %v2546_v40  ;;  %vm717_vm10 = vcmp.lt.s32.totalorder %v2555_v47, 1  ;;  %vm718_vm11 = vcmp.lt.s32.totalorder %v2555_v47, 2 }
  0x2d   : > { %v492_v53 = vsub.s32 32, %v491_v44  ;;  %v494_v54 = vshll.u32 %v2402_v49, %v491_v44  ;;  %v497_v55 = vshll.u32 %v2403_v51, %v491_v44  ;;  %v500_v57 = vshll.u32 %v2404_v56, %v491_v44 }
  0x2e   : > { %v503_v59 = vshll.u32 %v2405_v58, %v491_v44  ;;  %v506_v61 = vshll.u32 %v2406_v60, %v491_v44  ;;  %vm509_vm5 = vcmp.lt.s32.totalorder %v490_v43, 1  ;;  %vm510_vm7 = vcmp.lt.s32.totalorder %v490_v43, 2 }
  0x2f   : > { %v493_v63 = vshrl.u32 %v2402_v49, %v492_v53  ;;  %v495_v1 = vshrl.u32 %v2403_v51, %v492_v53  ;;  %v498_v2 = vshrl.u32 %v2404_v56, %v492_v53  ;;  %v501_v3 = vshrl.u32 %v2405_v58, %v492_v53 }
  0x30   : > { %v504_v6 = vshrl.u32 %v2406_v60, %v492_v53  ;;  %v507_v8 = vshrl.u32 %v2407_v7, %v492_v53  ;;  %vm511_vm8 = vcmp.lt.s32.totalorder %v490_v43, 3  ;;  %vm512_vm9 = vcmp.lt.s32.totalorder %v490_v43, 4 }
  0x31   : > { %v496_v9 = vor.u32 %v495_v1, %v494_v54  ;;  %v499_v10 = vor.u32 %v498_v2, %v497_v55  ;;  %v502_v11 = vor.u32 %v501_v3, %v500_v57  ;;  %v703_v14 = vshrl.u32 %v2403_v51, %v700_v48 }
  0x32   : > { %v505_v12 = vor.u32 %v504_v6, %v503_v59  ;;  %v508_v13 = vor.u32 %v507_v8, %v506_v61  ;;  %v706_v16 = vshrl.u32 %v2404_v56, %v700_v48  ;;  %v701_v28 = vshrl.u32 %v2402_v49, %v700_v48 }
  0x33   : > { %v513_v17 = vsel %vm509_vm5, %v493_v63, %v496_v9  ;;  %v514_v18 = vsel %vm512_vm9, %v502_v11, 2102212464  ;;  %v517_v20 = vsel %vm509_vm5, %v496_v9, %v499_v10  ;;  %v521_v24 = vsel %vm509_vm5, %v499_v10, %v502_v11 }
  0x34   : > { %v515_v25 = vsel %vm511_vm8, %v499_v10, %v514_v18  ;;  %v518_v26 = vsel %vm512_vm9, %v505_v12, 920167782  ;;  %v522_v27 = vsel %vm512_vm9, %v508_v13, 1326507024  ;;  %v704_v32 = vor.u32 %v703_v14, %v702_v50 }
  0x35   : > { %v516_v29 = vsel %vm510_vm7, %v513_v17, %v515_v25  ;;  %v519_v30 = vsel %vm511_vm8, %v502_v11, %v518_v26  ;;  %v523_v31 = vsel %vm511_vm8, %v505_v12, %v522_v27  ;;  %v707_v35 = vor.u32 %v706_v16, %v705_v52 }
  0x36   : > { %v520_v33 = vsel %vm510_vm7, %v517_v20, %v519_v30  ;;  %v524_v34 = vsel %vm510_vm7, %v521_v24, %v523_v31  ;;  %v709_v36 = vshrl.u32 %v2405_v58, %v700_v48  ;;  %v711_v50 = vshll.u32 %v2405_v58, %v2546_v40 }
  0x37   : > { %v2590_v37 = vmul.u32.u64.low %v2551_v45, %v524_v34  ;;  %v2591_v38 = vmul.u32.u64.high %v2551_v45, %v524_v34, %v2590_v37  ;;  %v2594_v39 = vmul.u32.u64.low %v2551_v45, %v520_v33  ;;  %v2595_v44 = vmul.u32.u64.high %v2551_v45, %v520_v33, %v2594_v39 }
  0x38   : > { %v710_v53 = vor.u32 %v709_v36, %v708_v62  ;;  %v712_v54 = vshrl.u32 %v2406_v60, %v700_v48  ;;  %v714_v43 = vshll.u32 %v2406_v60, %v2546_v40  ;;  %v532_v52 = vmul.u32 %v2551_v45, %v516_v29 }
  0x39   : > { %v715_v55 = vshrl.u32 %v2407_v7, %v700_v48  ;;  %v385_v57 = vsel %vm384_vm6, %v2549_v42, 0  ;;  %vm719_vm12 = vcmp.lt.s32.totalorder %v2555_v47, 3  ;;  %vm720_vm13 = vcmp.lt.s32.totalorder %v2555_v47, 4 }
  0x3a   : > { %v713_v59 = vor.u32 %v712_v54, %v711_v50  ;;  %vm534_vm14 = vc.u32 %v2591_v38, %v2594_v39  ;;  %v535_v40 = vadd.s32 1, %v2595_v44  ;;  %v725_v48 = vsel %vm717_vm10, %v704_v32, %v707_v35 }
  0x3b   : > { %v716_v45 = vor.u32 %v715_v55, %v714_v43  ;;  %v721_v61 = vsel %vm717_vm10, %v701_v28, %v704_v32  ;;  %v722_v62 = vsel %vm720_vm13, %v710_v53, 2102212464  ;;  %v729_v1 = vsel %vm717_vm10, %v707_v35, %v710_v53 }
  0x3c   : > { %v726_v63 = vsel %vm720_vm13, %v713_v59, 920167782  ;;  %v536_v42 = vsel %vm534_vm14, %v535_v40, %v2595_v44  ;;  %v723_v2 = vsel %vm719_vm12, %v707_v35, %v722_v62  ;;  %v387_v20 = vand.u32 31, %v385_v57 }
  0x3d   : > { %v727_v3 = vsel %vm719_vm12, %v710_v53, %v726_v63  ;;  %v730_v6 = vsel %vm720_vm13, %v716_v45, 1326507024  ;;  %v537_v8 = vadd.s32 %v536_v42, %v532_v52  ;;  %v724_v11 = vsel %vm718_vm11, %v721_v61, %v723_v2 }
  0x3e   : > { %v728_v9 = vsel %vm718_vm11, %v725_v48, %v727_v3  ;;  %v731_v10 = vsel %vm719_vm12, %v713_v59, %v730_v6  ;;  %v2638_v24 = vrot.slane %v2519_v4, 2  ;;  %v380_v25 = vand.u32 8388607, %v373_v41 }
  0x3f   : > { %v732_v12 = vsel %vm718_vm11, %v729_v1, %v731_v10  ;;  %v2629_v13 = vmul.u32.u64.low %v2553_v46, %v728_v9  ;;  %v2630_v14 = vmul.u32.u64.high %v2553_v46, %v728_v9, %v2629_v13  ;;  %v538_v16 = vadd.s32 536870912, %v537_v8 }
  0x40   : > { %v2634_v17 = vmul.u32.u64.low %v2553_v46, %v732_v12  ;;  %v2635_v18 = vmul.u32.u64.high %v2553_v46, %v732_v12, %v2634_v17  ;;  %v740_v47 = vmul.u32 %v2553_v46, %v724_v11  ;;  %v388_v28 = vsub.s32 32, %v387_v20 }
  0x41   : > { %v2642_v26 = vshrl.u32 %v538_v16, 30  ;;  %v743_v27 = vadd.s32 1, %v2630_v14  ;;  %v381_v31 = vor.u32 8388608, %v380_v25  ;;  %v584_v4 = vand.u32 2139095040, %v2638_v24 }
  0x42   : > { %vm742_vm15 = vc.u32 %v2635_v18, %v2629_v13  ;;  %v386_v34 = vshrl.u32 %v385_v57, 5  ;;  %v399_v35 = vshll.u32 %v2405_v58, %v387_v20  ;;  %v393_v46 = vshll.u32 %v2403_v51, %v387_v20 }
  0x43   : > { %v540_v29 = vshll.u32 %v2642_v26, 30  ;;  %v744_v30 = vsel %vm742_vm15, %v743_v27, %v2630_v14  ;;  %v396_v36 = vshll.u32 %v2404_v56, %v387_v20  ;;  %v400_v37 = vshrl.u32 %v2406_v60, %v388_v28 }
  0x44   : > { %v745_v33 = vadd.s32 %v744_v30, %v740_v47  ;;  %v402_v44 = vshll.u32 %v2406_v60, %v387_v20  ;;  %v394_v54 = vshrl.u32 %v2404_v56, %v388_v28  ;;  %v397_v43 = vshrl.u32 %v2405_v58, %v388_v28 }
  0x45   : > { %v2651_v32 = vsub.s32 %v537_v8, %v540_v29  ;;  %v390_v52 = vshll.u32 %v2402_v49, %v387_v20  ;;  %v391_v55 = vshrl.u32 %v2403_v51, %v388_v28  ;;  %v403_v57 = vshrl.u32 %v2407_v7, %v388_v28 }
  0x46   : > { %v746_v50 = vadd.s32 536870912, %v745_v33  ;;  %v401_v45 = vor.u32 %v400_v37, %v399_v35  ;;  %v581_v48 = vand.u32 2147483647, %v2638_v24  ;;  %vm408_vm1 = vcmp.lt.s32.totalorder %v386_v34, 4 }
  0x47   : > { %v543_v53 = vsub.s32 0, %v2651_v32  ;;  %v404_v61 = vor.u32 %v403_v57, %v402_v44  ;;  %v2668_v62 = vshll.u32 %v381_v31, 8  ;;  %v585_v63 = vshrl.u32 %v584_v4, 23 }
  0x48   : > { %v2665_v40 = vshrl.u32 %v746_v50, 30  ;;  %v389_v42 = vshrl.u32 %v2402_v49, %v388_v28  ;;  %v395_v2 = vor.u32 %v394_v54, %v393_v46  ;;  %v398_v3 = vor.u32 %v397_v43, %v396_v36 }
  0x49   : > { %v2083_v59 = vmin.u32 %v543_v53, %v2651_v32  ;;  %v392_v8 = vor.u32 %v391_v55, %v390_v52  ;;  %vm405_vm2 = vcmp.lt.s32.totalorder %v386_v34, 1  ;;  %vm407_vm3 = vcmp.lt.s32.totalorder %v386_v34, 3 }
  0x4a   : > { %v748_v6 = vshll.u32 %v2665_v40, 30  ;;  %v533_v9 = vadd.s32 %v2594_v39, %v2591_v38  ;;  %vm406_vm4 = vcmp.lt.s32.totalorder %v386_v34, 2  ;;  %v414_v11 = vsel %vm408_vm1, %v401_v45, 920167782 }
  0x4b   : > { %v545_v1 = vclz %v2083_v59  ;;  %v563_v12 = vsub.s32 4, %v2642_v26  ;;  %v410_v16 = vsel %vm408_vm1, %v398_v3, 2102212464  ;;  %v418_v17 = vsel %vm408_vm1, %v404_v61, 1326507024 }
  0x4c   : > { %v2676_v14 = vsub.s32 %v745_v33, %v748_v6  ;;  %v409_v20 = vsel %vm405_vm2, %v389_v42, %v392_v8  ;;  %v417_v25 = vsel %vm405_vm2, %v395_v2, %v398_v3  ;;  %v419_v47 = vsel %vm407_vm3, %v401_v45, %v418_v17 }
  0x4d   : > { %v2084_v10 = vadd.s32 4294967294, %v545_v1  ;;  %v413_v27 = vsel %vm405_vm2, %v392_v8, %v395_v2  ;;  %v415_v28 = vsel %vm407_vm3, %v398_v3, %v414_v11  ;;  %v411_v4 = vsel %vm407_vm3, %v395_v2, %v410_v16 }
  0x4e   : > { %v751_v39 = vsub.s32 0, %v2676_v14  ;;  %vm479_vm6 = vcmp.lt.s32.totalorder %v2537_v22, 0  ;;  %v420_v35 = vsel %vm406_vm4, %v417_v25, %v419_v47  ;;  %v2086_v46 = vadd.s32 4294967169, %v585_v63 }
  0x4f   : > { %vm2085_vm5 = vcmp.lt.s32.totalorder %v2084_v10, 0  ;;  %vm2693_vm7 = vcmp.le.f32.partialorder %v477_v23, 0.7853982  ;;  %v564_v53 = vsel %vm479_vm6, %v563_v12, %v2642_v26  ;;  %v412_v54 = vsel %vm406_vm4, %v409_v20, %v411_v4 }
  0x50   : > { %v548_v38 = vsel %vm2085_vm5, 0, %v2084_v10  ;;  %v2091_v33 = vmin.u32 %v751_v39, %v2676_v14  ;;  %v2704_v43 = vand.u32 8388607, %v581_v48  ;;  %v591_v26 = vadd.s32 1, %v2086_v46 }
  0x51   : > { %v549_v29 = vsub.s32 32, %v548_v38  ;;  %v550_v30 = vshll.u32 %v2651_v32, %v548_v38  ;;  %v553_v31 = vsub.s32 4294967266, %v548_v38  ;;  %v416_v32 = vsel %vm406_vm4, %v413_v27, %v415_v28 }
  0x52   : > { %v753_v50 = vclz %v2091_v33  ;;  %v2707_v55 = vmul.u32.u64.low %v2668_v62, %v420_v35  ;;  %v2708_v57 = vmul.u32.u64.high %v2668_v62, %v420_v35, %v2707_v55  ;;  %v741_v1 = vadd.s32 %v2629_v13, %v2635_v18 }
  0x53   : > { %v551_v37 = vshrl.u32 %v533_v9, %v549_v29  ;;  %v554_v44 = vadd.s32 127, %v553_v31  ;;  %v2711_v45 = vmul.u32.u64.low %v2668_v62, %v416_v32  ;;  %v2712_v61 = vmul.u32.u64.high %v2668_v62, %v416_v32, %v2711_v45 }
  0x54   : > { %v2092_v59 = vadd.s32 4294967294, %v753_v50  ;;  %v566_v42 = vsel %vm2693_vm7, 0, %v564_v53  ;;  %v771_v2 = vsub.s32 4, %v2665_v40  ;;  %vm592_vm9 = vcmp.gt.s32.totalorder %v591_v26, 0 }
  0x55   : > { %v552_v52 = vor.u32 %v551_v37, %v550_v30  ;;  %v555_v23 = vshll.u32 %v554_v44, 23  ;;  %v2408_v3 = vmov 0   ;;  %v428_v9 = vmul.u32 %v2668_v62, %v412_v54 }
  0x56   : > { %vm2093_vm8 = vcmp.lt.s32.totalorder %v2092_v59, 0  ;;  %1272 = vmatprep.mubr.bf16.mxu0 %v2408_v3  ;;  %1545 = vmatprep.mubr.bf16.mxu1 %v2408_v3  ;;  %vm430_vm10 = vc.u32 %v2708_v57, %v2711_v45  ;;  %v431_v11 = vadd.s32 1, %v2712_v61  ;;  %vm687_vm11 = vcmp.lt.s32.totalorder %v2530_v15, 0 }
  0x57   : > { %v556_v63 = vor.u32 4788187, %v555_v23  ;;  %v559_v34 = vcvt.s32.f32 %v552_v52  ;;  %v756_v8 = vsel %vm2093_vm8, 0, %v2092_v59  ;;  %v593_v16 = vsel %vm592_vm9, %v591_v26, 0 }
  0x58   : > { %v757_v13 = vsub.s32 32, %v756_v8  ;;  %v758_v18 = vshll.u32 %v2676_v14, %v756_v8  ;;  %v761_v10 = vsub.s32 4294967266, %v756_v8  ;;  %v570_v17 = vadd.s32 3, %v566_v42 }
  0x59   : > { %v557_v6 = vand.u32 2147483647, %v556_v63  ;;  %v432_v47 = vsel %vm430_vm10, %v431_v11, %v2712_v61  ;;  %vm2731_vm12 = vcmp.le.f32.partialorder %v685_v19, 0.7853982  ;;  %v595_v39 = vand.u32 31, %v593_v16 }
  0x5a   : > { %v759_v20 = vshrl.u32 %v741_v1, %v757_v13  ;;  %v762_v25 = vadd.s32 127, %v761_v10  ;;  %v433_v14 = vadd.s32 %v432_v47, %v428_v9  ;;  %v772_v29 = vsel %vm687_vm11, %v771_v2, %v2665_v40 }
  0x5b   : > { %v560_v12 = vmul.f32 %v559_v34, %v557_v6  ;;  %v589_v30 = vor.u32 8388608, %v2704_v43  ;;  %v2741_v4 = vand.u32 3, %v566_v42  ;;  %v596_v19 = vsub.s32 32, %v595_v39 }
  0x5c   : > { %v760_v27 = vor.u32 %v759_v20, %v758_v18  ;;  %v763_v28 = vshll.u32 %v762_v25, 23  ;;  %v434_v33 = vadd.s32 536870912, %v433_v14  ;;  %v2746_v46 = vand.u32 3, %v570_v17 }
  0x5d   : > { %v561_v38 = vxor.u32 2147483648, %v560_v12  ;;  %v774_v40 = vsel %vm2731_vm12, 0, %v772_v29  ;;  %v2752_v53 = vshrl.u32 %v593_v16, 5  ;;  %v598_v54 = vshll.u32 %v2402_v49, %v595_v39 }
  0x5e   : > { %v764_v37 = vor.u32 4788187, %v763_v28  ;;  %v767_v44 = vcvt.s32.f32 %v760_v27  ;;  %v2750_v32 = vshrl.u32 %v434_v33, 30  ;;  %v601_v52 = vshll.u32 %v2403_v51, %v595_v39 }
  0x5f   : > { %v562_v31 = vsel %vm479_vm6, %v561_v38, %v560_v12  ;;  %v599_v23 = vshrl.u32 %v2403_v51, %v596_v19  ;;  %v602_v55 = vshrl.u32 %v2404_v56, %v596_v19  ;;  %v604_v59 = vshll.u32 %v2404_v56, %v595_v39 }
  0x60   : > { %v565_v35 = vsel %vm2693_vm7, %v2537_v22, %v562_v31  ;;  %v765_v50 = vand.u32 2147483647, %v764_v37  ;;  %v436_v36 = vshll.u32 %v2750_v32, 30  ;;  %v605_v26 = vshrl.u32 %v2405_v58, %v596_v19 }
  0x61   : > { %2242 = vcosq.f32 %v565_v35  ;;  %v607_v63 = vshll.u32 %v2405_v58, %v595_v39  ;;  %v608_v34 = vshrl.u32 %v2406_v60, %v596_v19  ;;  %vm988_vm13 = vcmp.lt.s32.totalorder %v2741_v4, 2 }
  0x62   : > { %2244 = vsinq.f32 %v565_v35  ;;  %v768_v61 = vmul.f32 %v767_v44, %v765_v50  ;;  %vm989_vm14 = vcmp.eq.s32.totalorder %v2741_v4, 0  ;;  %v2765_v1 = vsub.s32 %v433_v14, %v436_v36 }
  0x63   : > { %v610_v42 = vshll.u32 %v2406_v60, %v595_v39  ;;  %vm992_vm15 = vcmp.eq.s32.totalorder %v2741_v4, 2  ;;  %v609_v2 = vor.u32 %v608_v34, %v607_v63  ;;  %v611_v56 = vshrl.u32 %v2407_v7, %v596_v19 }
  0x64   : > { %v769_v51 = vxor.u32 2147483648, %v768_v61  ;;  %vm573_vm1 = vcmp.eq.s32.totalorder %v2746_v46, 0  ;;  %vm576_vm2 = vcmp.eq.s32.totalorder %v2746_v46, 2  ;;  %v778_v58 = vadd.s32 3, %v774_v40 }
  0x65   : > { %v439_v6 = vsub.s32 0, %v2765_v1  ;;  %vm616_vm3 = vcmp.lt.s32.totalorder %v2752_v53, 4  ;;  %vm569_vm4 = vweird.f32 %v2537_v22  ;;  %v600_v8 = vor.u32 %v599_v23, %v598_v54 }
  0x66   : > { %v770_v60 = vsel %vm687_vm11, %v769_v51, %v768_v61  ;;  %v603_v9 = vor.u32 %v602_v55, %v601_v52  ;;  %v606_v13 = vor.u32 %v605_v26, %v604_v59  ;;  %v612_v10 = vor.u32 %v611_v56, %v610_v42 }
  0x67   : > { %v773_v7 = vsel %vm2731_vm12, %v2530_v15, %v770_v60  ;;  %v2079_v18 = vmin.u32 %v439_v6, %v2765_v1  ;;  %vm613_vm5 = vcmp.lt.s32.totalorder %v2752_v53, 1  ;;  %v2782_v11 = vand.u32 3, %v774_v40 }
  0x68   : > { %2246 = vcosq.f32 %v773_v7  ;;  %vm615_vm6 = vcmp.lt.s32.totalorder %v2752_v53, 3  ;;  %v622_v12 = vsel %vm616_vm3, %v609_v2, 920167782  ;;  %v597_v20 = vshrl.u32 %v2402_v49, %v596_v19 }
  0x69   : > { %2248 = vsinq.f32 %v773_v7  ;;  %v441_v17 = vclz %v2079_v18  ;;  %vm614_vm7 = vcmp.lt.s32.totalorder %v2752_v53, 2  ;;  %v618_v38 = vsel %vm616_vm3, %v606_v13, 2102212464 }
  0x6a   : > { %v621_v62 = vsel %vm613_vm5, %v600_v8, %v603_v9  ;;  %v625_v14 = vsel %vm613_vm5, %v603_v9, %v606_v13  ;;  %v623_v28 = vsel %vm615_vm6, %v606_v13, %v622_v12  ;;  %v626_v49 = vsel %vm616_vm3, %v612_v10, 1326507024 }
  0x6b   : > { %v2243_v16 = vpop.eup %2242  ;;  %v2080_v27 = vadd.s32 4294967294, %v441_v17  ;;  %v779_v29 = vand.u32 3, %v778_v58  ;;  %v627_v33 = vsel %vm615_vm6, %v609_v2, %v626_v49  ;;  %v629_v19 = vshll.u32 %v589_v30, 8 }
  0x6c   : > { %v2245_v25 = vpop.eup %2244  ;;  %v577_v47 = vxor.u32 2147483648, %v2243_v16  ;;  %v617_v37 = vsel %vm613_vm5, %v597_v20, %v600_v8  ;;  %v628_v44 = vsel %vm614_vm7, %v625_v14, %v627_v33  ;;  %v619_v54 = vsel %vm615_vm6, %v603_v9, %v618_v38 }
  0x6d   : > { %v574_v39 = vxor.u32 2147483648, %v2245_v25  ;;  %vm2081_vm8 = vcmp.lt.s32.totalorder %v2080_v27, 0  ;;  %v624_v43 = vsel %vm614_vm7, %v621_v62, %v623_v28  ;;  %vm572_vm9 = vcmp.lt.s32.totalorder %v2746_v46, 2 }
  0x6e   : > { %v994_v31 = vsel %vm992_vm15, %v577_v47, %v2245_v25  ;;  %v444_v50 = vsel %vm2081_vm8, 0, %v2080_v27  ;;  %v578_v30 = vsel %vm576_vm2, %v577_v47, %v2245_v25  ;;  %vm1194_vm10 = vcmp.lt.s32.totalorder %v2782_v11, 2 }
  0x6f   : > { %v991_v35 = vsel %vm989_vm14, %v2243_v16, %v574_v39  ;;  %v575_v4 = vsel %vm573_vm1, %v2243_v16, %v574_v39  ;;  %vm1233_vm11 = vcmask 1044480   ;;  %v449_v36 = vsub.s32 4294967266, %v444_v50 }
  0x70   : > { %v995_v40 = vsel %vm988_vm13, %v991_v35, %v994_v31  ;;  %v2827_v23 = vmul.u32.u64.low %v629_v19, %v628_v44  ;;  %v2828_v55 = vmul.u32.u64.high %v629_v19, %v628_v44, %v2827_v23  ;;  %vm1195_vm12 = vcmp.eq.s32.totalorder %v2782_v11, 0 }
  0x71   : > { %v2822_v52 = vsel %vm569_vm4, nan, %v995_v40  ;;  %v620_v59 = vsel %vm614_vm7, %v617_v37, %v619_v54  ;;  %v2833_v61 = vmul.u32.u64.low %v629_v19, %v624_v43  ;;  %v2834_v26 = vmul.u32.u64.high %v629_v19, %v624_v43, %v2833_v61  ;;  %v2229_v37 = vld [vmem:[%s3024_s2 + $0x8] sm:$0xff]  }
  0x72   : > { %v2247_v63 = vpop.eup %2246  ;;  %vm780_vm13 = vcmp.lt.s32.totalorder %v779_v29, 2  ;;  %vm781_vm14 = vcmp.eq.s32.totalorder %v779_v29, 0  ;;  %vm784_vm15 = vcmp.eq.s32.totalorder %v779_v29, 2  ;;  %vm1198_vm2 = vcmp.eq.s32.totalorder %v2782_v11, 2 }
  0x73   : > { %v2249_v34 = vpop.eup %2248  ;;  %v579_v42 = vsel %vm572_vm9, %v575_v4, %v578_v30  ;;  %v785_v51 = vxor.u32 2147483648, %v2247_v63  ;;  %v429_v2 = vadd.s32 %v2711_v45, %v2708_v57  ;;  %v445_v56 = vsub.s32 32, %v444_v50 }
  0x74   : > { %v782_v53 = vxor.u32 2147483648, %v2249_v34  ;;  %v450_v58 = vadd.s32 127, %v449_v36  ;;  %v636_v6 = vmul.u32 %v629_v19, %v620_v59  ;;  %vm638_vm1 = vc.u32 %v2828_v55, %v2833_v61 }
  0x75   : > { %vm777_vm3 = vweird.f32 %v2530_v15  ;;  %v786_v60 = vsel %vm784_vm15, %v785_v51, %v2249_v34  ;;  %v1200_v8 = vsel %vm1198_vm2, %v785_v51, %v2249_v34  ;;  %v639_v9 = vadd.s32 1, %v2834_v26 }
  0x76   : > { %v580_v46 = vsel %vm569_vm4, nan, %v579_v42  ;;  %v783_v13 = vsel %vm781_vm14, %v2247_v63, %v782_v53  ;;  %v1197_v57 = vsel %vm1195_vm12, %v2247_v63, %v782_v53  ;;  %v446_v45 = vshll.u32 %v2765_v1, %v444_v50 }
  0x77   : > { %v787_v7 = vsel %vm780_vm13, %v783_v13, %v786_v60  ;;  %v1201_v18 = vsel %vm1194_vm10, %v1197_v57, %v1200_v8  ;;  %v447_v15 = vshrl.u32 %v429_v2, %v445_v56  ;;  %v640_v10 = vsel %vm638_vm1, %v639_v9, %v2834_v26 }
  0x78   : > { %v788_v12 = vsel %vm777_vm3, nan, %v787_v7  ;;  %v2854_v16 = vsel %vm777_vm3, nan, %v1201_v18  ;;  %v451_v22 = vshll.u32 %v450_v58, 23  ;;  %v641_v17 = vadd.s32 %v640_v10, %v636_v6 }
  0x79   : > { %v790_v20 = vpack.c.bf16 %v788_v12, %v580_v46  ;;  %v1204_v25 = vpack.c.bf16 %v2854_v16, %v2822_v52  ;;  %v448_v1 = vor.u32 %v447_v15, %v446_v45  ;;  %vm375_vm4 = vcmp.lt.s32.totalorder %v2535_v21, 0  ;;  %v2230_v52 = vld [vmem:[%s3023_s1] sm:$0xff]  }
  0x7a   : > { %v642_v47 = vadd.s32 536870912, %v641_v17  ;;  %v452_v38 = vor.u32 4788187, %v451_v22  ;;  %v637_v35 = vadd.s32 %v2833_v61, %v2828_v55  ;;  %vm2863_vm6 = vcmp.le.f32.partialorder %v373_v41, 0.7853982 }
  0x7b   : > { %2112 = vmatprep.subr.msk.bf16.mxu0 %vm1233_vm11, %v790_v20  ;;  %v455_v39 = vcvt.s32.f32 %v448_v1  ;;  %v459_v36 = vsub.s32 4, %v2750_v32  ;;  %vm583_vm7 = vcmp.lt.s32.totalorder %v2638_v24, 0  ;;  %vm582_vm8 = vcmp.le.f32.partialorder %v581_v48, 0.7853982 }
  0x7c   : > { %v643_v62 = vshrl.u32 %v642_v47, 30  ;;  %v453_v14 = vand.u32 2147483647, %v452_v38  ;;  %vm465_vm14 = vweird.f32 %v2535_v21  ;;  %vm673_vm1 = vweird.f32 %v2638_v24 }
  0x7d   : > { %v460_v26 = vsel %vm375_vm4, %v459_v36, %v2750_v32 }
  0x7e   : > { %v644_v11 = vshll.u32 %v643_v62, 30  ;;  %v456_v49 = vmul.f32 %v455_v39, %v453_v14  ;;  %v667_v34 = vsub.s32 4, %v643_v62  ;;  %v462_v42 = vsel %vm2863_vm6, 0, %v460_v26 }
  0x7f   : > { %v466_v53 = vadd.s32 3, %v462_v42  ;;  %v1207_v39 = vpack.c.bf16 %v2523_v5, %v2523_v5 }
  0x80   : > { %v645_v27 = vsub.s32 %v641_v17, %v644_v11  ;;  %v457_v33 = vxor.u32 2147483648, %v456_v49  ;;  %v668_v56 = vsel %vm583_vm7, %v667_v34, %v643_v62  ;;  %v884_v62 = vand.u32 3, %v462_v42 }
  0x81   : > { %v670_v60 = vsel %vm582_vm8, 0, %v668_v56  ;;  %v467_v9 = vand.u32 3, %v466_v53 }
  0x82   : > { %v647_v28 = vsub.s32 0, %v645_v27  ;;  %v458_v40 = vsel %vm375_vm4, %v457_v33, %v456_v49  ;;  %v674_v46 = vadd.s32 3, %v670_v60  ;;  %v1090_v14 = vand.u32 3, %v670_v60  ;;  %v2228_v49 = vld [vmem:[%s3024_s2] sm:$0xff]  }
  0x83   : > { %v461_v23 = vsel %vm2863_vm6, %v2535_v21, %v458_v40  ;;  %vm469_vm9 = vcmp.eq.s32.totalorder %v467_v9, 0  ;;  %vm472_vm10 = vcmp.eq.s32.totalorder %v467_v9, 2  ;;  %vm468_vm12 = vcmp.lt.s32.totalorder %v467_v9, 2  ;;  %v2231_v21 = vld [vmem:[%s3023_s1 + $0x8] sm:$0xff]  }
  0x84   : > { %v2087_v29 = vmin.u32 %v647_v28, %v645_v27  ;;  %2250 = vcosq.f32 %v461_v23  ;;  %v675_v45 = vand.u32 3, %v674_v46  ;;  %vm889_vm3 = vcmp.eq.s32.totalorder %v884_v62, 2 }
  0x85   : > { %2252 = vsinq.f32 %v461_v23  ;;  %vm1226_vm4 = vcmask 80896   ;;  %vm1092_vm6 = vcmp.eq.s32.totalorder %v1090_v14, 0 }
  0x86   : > { %v649_v31 = vclz %v2087_v29  ;;  %vm680_vm13 = vcmp.eq.s32.totalorder %v675_v45, 2  ;;  %vm677_vm15 = vcmp.eq.s32.totalorder %v675_v45, 0  ;;  %vm676_vm2 = vcmp.lt.s32.totalorder %v675_v45, 2 }
  0x88   : > { %v2088_v19 = vadd.s32 4294967294, %v649_v31 }
  0x8a   : > { %vm2089_vm5 = vcmp.lt.s32.totalorder %v2088_v19, 0 }
  0x8b   : > { %v652_v44 = vsel %vm2089_vm5, 0, %v2088_v19  ;;  %vm886_vm5 = vcmp.eq.s32.totalorder %v884_v62, 0 }
  0x8c   : > { %v653_v50 = vsub.s32 32, %v652_v44  ;;  %v654_v54 = vshll.u32 %v645_v27, %v652_v44  ;;  %v657_v43 = vsub.s32 4294967266, %v652_v44  ;;  %v1206_v27 = vpack.c.bf16 %v2513_v0, %v2513_v0 }
  0x8e   : > { %v655_v30 = vshrl.u32 %v637_v35, %v653_v50  ;;  %v658_v4 = vadd.s32 127, %v657_v43  ;;  %v2251_v32 = vpop.eup %2250  ;;  %v1311_v29 = vsel %vm364_vm0, %v1206_v27, 0  ;;  %v2234_v27 = vld [vmem:[%s3026_s4] sm:$0xff]  }
  0x8f   : > { %v2253_v8 = vpop.eup %2252  ;;  %v473_v57 = vxor.u32 2147483648, %v2251_v32 }
  0x90   : > { %v656_v55 = vor.u32 %v655_v30, %v654_v54  ;;  %v659_v41 = vshll.u32 %v658_v4, 23  ;;  %v470_v13 = vxor.u32 2147483648, %v2253_v8 }
  0x91   : > { %v474_v7 = vsel %vm472_vm10, %v473_v57, %v2253_v8  ;;  %v891_v5 = vsel %vm889_vm3, %v473_v57, %v2253_v8 }
  0x92   : > { %v660_v59 = vor.u32 4788187, %v659_v41  ;;  %v663_v61 = vcvt.s32.f32 %v656_v55  ;;  %v471_v48 = vsel %vm469_vm9, %v2251_v32, %v470_v13  ;;  %v888_v0 = vsel %vm886_vm5, %v2251_v32, %v470_v13 }
  0x93   : > { %v475_v10 = vsel %vm468_vm12, %v471_v48, %v474_v7  ;;  %vm1091_vm9 = vcmp.lt.s32.totalorder %v1090_v14, 2 }
  0x94   : > { %v661_v63 = vand.u32 2147483647, %v660_v59  ;;  %v476_v20 = vsel %vm465_vm14, nan, %v475_v10 }
  0x96   : > { %v664_v51 = vmul.f32 %v663_v61, %v661_v63 }
  0x98   : > { %v665_v2 = vxor.u32 2147483648, %v664_v51 }
  0x9a   : > { %v666_v58 = vsel %vm583_vm7, %v665_v2, %v664_v51  ;;  %vm1095_vm7 = vcmp.eq.s32.totalorder %v1090_v14, 2 }
  0x9b   : > { %v669_v6 = vsel %vm582_vm8, %v2638_v24, %v666_v58  ;;  %vm885_vm8 = vcmp.lt.s32.totalorder %v884_v62, 2  ;;  %v2232_v24 = vld [vmem:[%s3025_s3] sm:$0xff]  }
  0x9c   : > { %2254 = vcosq.f32 %v669_v6  ;;  %v892_v19 = vsel %vm885_vm8, %v888_v0, %v891_v5 }
  0x9d   : > { %2256 = vsinq.f32 %v669_v6  ;;  %v893_v44 = vsel %vm465_vm14, nan, %v892_v19 }
  0xa6   : > { %v2255_v18 = vpop.eup %2254 }
  0xa7   : > { %v2257_v15 = vpop.eup %2256  ;;  %v681_v12 = vxor.u32 2147483648, %v2255_v18 }
  0xa8   : > { %v678_v22 = vxor.u32 2147483648, %v2257_v15 }
  0xa9   : > { %v682_v17 = vsel %vm680_vm13, %v681_v12, %v2257_v15  ;;  %v1097_v33 = vsel %vm1095_vm7, %v681_v12, %v2257_v15 }
  0xaa   : > { %v679_v47 = vsel %vm677_vm15, %v2255_v18, %v678_v22  ;;  %v1094_v31 = vsel %vm1092_vm6, %v2255_v18, %v678_v22 }
  0xab   : > { %v683_v1 = vsel %vm676_vm2, %v679_v47, %v682_v17  ;;  %v1098_v35 = vsel %vm1091_vm9, %v1094_v31, %v1097_v33 }
  0xac   : > { %v684_v38 = vsel %vm673_vm1, nan, %v683_v1  ;;  %v1099_v40 = vsel %vm673_vm1, nan, %v1098_v35 }
  0xad   : > { %v789_v11 = vpack.c.bf16 %v684_v38, %v476_v20  ;;  %v1203_v50 = vpack.c.bf16 %v1099_v40, %v893_v44 }
  0xaf   : > { %v1235_v28 = vsel %vm1233_vm11, %v789_v11, 0  ;;  %v1390_v16 = vsel %vm1233_vm11, %v1203_v50, 0 }
  0xb0   : > { %1241 = vmatpush1.bf16.msra.mxu0 %v1235_v28  ;;  %v2235_v28 = vld [vmem:[%s3026_s4 + $0x8] sm:$0xff]  }
  0xb1   : > { %2117 = vmatprep.subr.msk.bf16.mxu0 %vm364_vm0, %v1207_v39  ;;  %vm1303_vm0 = vcmask 31744  }
  0xb3   : > { %2113 = vmatmul.mubr.msk.bf16.vlgmr.msra.gmra.mrb[0].mxu0 %vm1226_vm4, %v2228_v49 }
  0xb4   : > { %1317 = vmatpush1.bf16.msra.mxu0 %v1311_v29  ;;  %1282 = vmatprep.mubr.bf16.mxu0 %v2408_v3 }
  0xb5   : > { %2122 = vmatprep.subr.msk.bf16.mxu0 %vm1233_vm11, %v1204_v25  ;;  %v2233_v25 = vld [vmem:[%s3025_s3 + $0x8] sm:$0xff]   ;;  %vm1506_vm11 = vcmask 261120  }
  0xbb   : > { %2114 = vmatmul.mubr.msk.bf16.gmra.mrb[4].mxu0 %vm1226_vm4, %v2229_v37 }
  0xbc   : > { %1348 = vmatprep.mubr.bf16.mxu0 %v2408_v3 }
  0xc3   : > { %2118 = vmatmul.mubr.msk.bf16.vlgmr.msra.gmra.mrb[0].mxu0 %vm1303_vm0, %v2230_v52 }
  0xc4   : > { %1396 = vmatpush1.bf16.msra.mxu0 %v1390_v16  ;;  %1358 = vmatprep.mubr.bf16.mxu0 %v2408_v3 }
  0xcb   : > { %2119 = vmatmul.mubr.msk.bf16.gmra.mrb[4].mxu0 %vm1303_vm0, %v2231_v21 }
  0xcc   : > { %1427 = vmatprep.mubr.bf16.mxu0 %v2408_v3 }
  0xd3   : > { %2123 = vmatmul.mubr.msk.bf16.vlgmr.msra.gmra.mrb[0].mxu0 %vm1226_vm4, %v2232_v24 }
  0xd4   : > { %1437 = vmatprep.mubr.bf16.mxu0 %v2408_v3 }
  0xdb   : > { %2124 = vmatmul.mubr.msk.bf16.gmra.mrb[4].mxu0 %vm1226_vm4, %v2233_v25 }
  0xdc   : > { %1872 = vmatprep.mubr.bf16.mxu0 %v2408_v3 }
 0x1a6   : > { %v1429_v54 = vpop.f32.mrb[0].mxu0 }
 0x1a7   : > { %v1456_v43 = vmul.f32 0.5, %v1429_v54  ;;  %v1431_v30 = vpop.f32.mrb[1].mxu0 }
 0x1a8   : > { %v1457_v4 = vmul.f32 0.5, %v1431_v30  ;;  %v1433_v36 = vpop.f32.mrb[2].mxu0 }
 0x1a9   : > { %2258 = vtanh.f32 %v1456_v43  ;;  %v1458_v23 = vmul.f32 0.5, %v1433_v36  ;;  %v1435_v55 = vpop.f32.mrb[3].mxu0 }
 0x1aa   : > { %2260 = vtanh.f32 %v1457_v4  ;;  %v1459_v41 = vmul.f32 0.5, %v1435_v55 }
 0x1ab   : > { %2262 = vtanh.f32 %v1458_v23 }
 0x1ac   : > { %2264 = vtanh.f32 %v1459_v41 }
 0x1ae   : > { %v1439_v59 = vpop.f32.mrb[4].mxu0 }
 0x1af   : > { %v1460_v61 = vmul.f32 0.5, %v1439_v59  ;;  %v1441_v26 = vpop.f32.mrb[5].mxu0 }
 0x1b0   : > { %v1461_v63 = vmul.f32 0.5, %v1441_v26  ;;  %v1443_v34 = vpop.f32.mrb[6].mxu0 }
 0x1b1   : > { %2266 = vtanh.f32 %v1460_v61  ;;  %v1462_v42 = vmul.f32 0.5, %v1443_v34  ;;  %v1445_v51 = vpop.f32.mrb[7].mxu0 }
 0x1b2   : > { %2268 = vtanh.f32 %v1461_v63  ;;  %v1463_v2 = vmul.f32 0.5, %v1445_v51 }
 0x1b3   : > { %v2259_v56 = vpop.eup %2258  ;;  %2270 = vtanh.f32 %v1462_v42 }
 0x1b4   : > { %v2261_v53 = vpop.eup %2260  ;;  %v1472_v58 = vadd.f32 1.0, %v2259_v56  ;;  %2272 = vtanh.f32 %v1463_v2 }
 0x1b5   : > { %v2263_v6 = vpop.eup %2262  ;;  %v1473_v60 = vadd.f32 1.0, %v2261_v53 }
 0x1b6   : > { %v2265_v32 = vpop.eup %2264  ;;  %v1474_v8 = vadd.f32 1.0, %v2263_v6  ;;  %v1480_v46 = vmul.f32 %v1472_v58, %v1456_v43 }
 0x1b7   : > { %v1475_v9 = vadd.f32 1.0, %v2265_v32  ;;  %v1481_v57 = vmul.f32 %v1473_v60, %v1457_v4 }
 0x1b8   : > { %v1482_v13 = vmul.f32 %v1474_v8, %v1458_v23 }
 0x1b9   : > { %v1483_v45 = vmul.f32 %v1475_v9, %v1459_v41 }
 0x1ba   : > { %v1488_v48 = vpack.c.bf16 %v1482_v13, %v1480_v46 }
 0x1bb   : > { %v2267_v7 = vpop.eup %2266  ;;  %v1489_v18 = vpack.c.bf16 %v1483_v45, %v1481_v57  ;;  %v2236_v45 = vld [vmem:[%s3027_s5] sm:$0xff]  }
 0x1bc   : > { %v2269_v15 = vpop.eup %2268  ;;  %v1476_v10 = vadd.f32 1.0, %v2267_v7 }
 0x1bd   : > { %v2271_v12 = vpop.eup %2270  ;;  %v1477_v22 = vadd.f32 1.0, %v2269_v15  ;;  %1513 = vmatprep.subr.bf16.mxu1 %v1489_v18 }
 0x1be   : > { %v2273_v17 = vpop.eup %2272  ;;  %v1478_v20 = vadd.f32 1.0, %v2271_v12  ;;  %1514 = vmatpush1.bf16.msra.mxu1 %v1488_v48  ;;  %v1484_v1 = vmul.f32 %v1476_v10, %v1460_v61  ;;  %v2237_v48 = vld [vmem:[%s3027_s5 + $0x8] sm:$0xff]  }
 0x1bf   : > { %v1479_v47 = vadd.f32 1.0, %v2273_v17  ;;  %v1485_v62 = vmul.f32 %v1477_v22, %v1461_v63 }
 0x1c0   : > { %v1486_v38 = vmul.f32 %v1478_v20, %v1462_v42 }
 0x1c1   : > { %v1487_v11 = vmul.f32 %v1479_v47, %v1463_v2 }
 0x1c2   : > { %v1490_v14 = vpack.c.bf16 %v1486_v38, %v1484_v1 }
 0x1c3   : > { %v1491_v39 = vpack.c.bf16 %v1487_v11, %v1485_v62 }
 0x1c5   : > { %1515 = vmatprep.subr.bf16.mxu1 %v1491_v39 }
 0x1c6   : > { %1516 = vmatpush1.bf16.msra.mxu1 %v1490_v14 }
 0x1c9   : > { %2127 = vmatmul.mubr.msk.bf16.vlgmr.msra.gmra.mrb[0].mxu1 %vm1506_vm11, %v2234_v27 }
 0x1ca   : > { %1555 = vmatprep.mubr.bf16.mxu1 %v2408_v3 }
 0x1d1   : > { %2128 = vmatmul.mubr.msk.bf16.gmra.mrb[4].mxu1 %vm1506_vm11, %v2235_v28 }
 0x1d2   : > { %1654 = vmatprep.mubr.bf16.mxu1 %v2408_v3 }
 0x29c   : > { %v1547_v49 = vpop.f32.mrb[0].mxu1 }
 0x29d   : > { %v1566_v29 = vmul.f32 0.5, %v1547_v49  ;;  %v1549_v5 = vpop.f32.mrb[1].mxu1 }
 0x29e   : > { %v1567_v0 = vmul.f32 0.5, %v1549_v5  ;;  %v1551_v31 = vpop.f32.mrb[2].mxu1 }
 0x29f   : > { %2274 = vtanh.f32 %v1566_v29  ;;  %v1568_v33 = vmul.f32 0.5, %v1551_v31  ;;  %v1553_v19 = vpop.f32.mrb[3].mxu1 }
 0x2a0   : > { %2276 = vtanh.f32 %v1567_v0  ;;  %v1569_v35 = vmul.f32 0.5, %v1553_v19 }
 0x2a1   : > { %2278 = vtanh.f32 %v1568_v33 }
 0x2a2   : > { %2280 = vtanh.f32 %v1569_v35 }
 0x2a4   : > { %v1557_v37 = vpop.f32.mrb[4].mxu1 }
 0x2a5   : > { %v1570_v44 = vmul.f32 0.5, %v1557_v37  ;;  %v1559_v40 = vpop.f32.mrb[5].mxu1 }
 0x2a6   : > { %v1571_v50 = vmul.f32 0.5, %v1559_v40  ;;  %v1561_v52 = vpop.f32.mrb[6].mxu1 }
 0x2a7   : > { %2282 = vtanh.f32 %v1570_v44  ;;  %v1572_v16 = vmul.f32 0.5, %v1561_v52  ;;  %v1563_v21 = vpop.f32.mrb[7].mxu1 }
 0x2a8   : > { %2284 = vtanh.f32 %v1571_v50  ;;  %v1573_v24 = vmul.f32 0.5, %v1563_v21 }
 0x2a9   : > { %v2275_v25 = vpop.eup %2274  ;;  %2286 = vtanh.f32 %v1572_v16 }
 0x2aa   : > { %v2277_v54 = vpop.eup %2276  ;;  %v1582_v43 = vadd.f32 1.0, %v2275_v25  ;;  %2288 = vtanh.f32 %v1573_v24 }
 0x2ab   : > { %v2279_v30 = vpop.eup %2278  ;;  %v1583_v4 = vadd.f32 1.0, %v2277_v54 }
 0x2ac   : > { %v2281_v36 = vpop.eup %2280  ;;  %v1584_v23 = vadd.f32 1.0, %v2279_v30  ;;  %v1590_v41 = vmul.f32 %v1582_v43, %v1566_v29 }
 0x2ad   : > { %v1585_v55 = vadd.f32 1.0, %v2281_v36  ;;  %v1591_v61 = vmul.f32 %v1583_v4, %v1567_v0 }
 0x2ae   : > { %v1592_v59 = vmul.f32 %v1584_v23, %v1568_v33 }
 0x2af   : > { %v1593_v26 = vmul.f32 %v1585_v55, %v1569_v35 }
 0x2b0   : > { %v1598_v63 = vpack.c.bf16 %v1592_v59, %v1590_v41 }
 0x2b1   : > { %v2283_v34 = vpop.eup %2282  ;;  %v1599_v42 = vpack.c.bf16 %v1593_v26, %v1591_v61  ;;  %v2238_v26 = vld [vmem:[%s3028_s6] sm:$0xff]  }
 0x2b2   : > { %v2285_v51 = vpop.eup %2284  ;;  %v1586_v2 = vadd.f32 1.0, %v2283_v34 }
 0x2b3   : > { %v2287_v56 = vpop.eup %2286  ;;  %v1587_v53 = vadd.f32 1.0, %v2285_v51  ;;  %1622 = vmatprep.subr.bf16.mxu1 %v1599_v42 }
 0x2b4   : > { %v2289_v58 = vpop.eup %2288  ;;  %v1588_v6 = vadd.f32 1.0, %v2287_v56  ;;  %1623 = vmatpush1.bf16.msra.mxu1 %v1598_v63  ;;  %v1594_v32 = vmul.f32 %v1586_v2, %v1570_v44  ;;  %v2239_v63 = vld [vmem:[%s3028_s6 + $0x8] sm:$0xff]  }
 0x2b5   : > { %v1589_v60 = vadd.f32 1.0, %v2289_v58  ;;  %v1595_v9 = vmul.f32 %v1587_v53, %v1571_v50 }
 0x2b6   : > { %v1596_v8 = vmul.f32 %v1588_v6, %v1572_v16 }
 0x2b7   : > { %v1597_v46 = vmul.f32 %v1589_v60, %v1573_v24 }
 0x2b8   : > { %v1600_v13 = vpack.c.bf16 %v1596_v8, %v1594_v32 }
 0x2b9   : > { %v1601_v57 = vpack.c.bf16 %v1597_v46, %v1595_v9 }
 0x2bb   : > { %1624 = vmatprep.subr.bf16.mxu1 %v1601_v57 }
 0x2bc   : > { %1625 = vmatpush1.bf16.msra.mxu1 %v1600_v13 }
 0x2bf   : > { %2131 = vmatmul.mubr.msk.bf16.vlgmr.msra.gmra.mrb[8].mxu1 %vm1506_vm11, %v2236_v45 }
 0x2c0   : > { %1664 = vmatprep.mubr.bf16.mxu1 %v2408_v3 }
 0x2c7   : > { %2132 = vmatmul.mubr.msk.bf16.gmra.mrb[12].mxu1 %vm1506_vm11, %v2237_v48 }
 0x2c8   : > { %1763 = vmatprep.mubr.bf16.mxu1 %v2408_v3 }
 0x392   : > { %v1656_v7 = vpop.f32.mrb[8].mxu1 }
 0x393   : > { %v1675_v18 = vmul.f32 0.5, %v1656_v7  ;;  %v1658_v15 = vpop.f32.mrb[9].mxu1 }
 0x394   : > { %v1676_v10 = vmul.f32 0.5, %v1658_v15  ;;  %v1660_v12 = vpop.f32.mrb[10].mxu1 }
 0x395   : > { %2290 = vtanh.f32 %v1675_v18  ;;  %v1677_v22 = vmul.f32 0.5, %v1660_v12  ;;  %v1662_v17 = vpop.f32.mrb[11].mxu1 }
 0x396   : > { %2292 = vtanh.f32 %v1676_v10  ;;  %v1678_v20 = vmul.f32 0.5, %v1662_v17 }
 0x397   : > { %2294 = vtanh.f32 %v1677_v22 }
 0x398   : > { %2296 = vtanh.f32 %v1678_v20 }
 0x39a   : > { %v1666_v47 = vpop.f32.mrb[12].mxu1 }
 0x39b   : > { %v1679_v1 = vmul.f32 0.5, %v1666_v47  ;;  %v1668_v38 = vpop.f32.mrb[13].mxu1 }
 0x39c   : > { %v1680_v62 = vmul.f32 0.5, %v1668_v38  ;;  %v1670_v11 = vpop.f32.mrb[14].mxu1 }
 0x39d   : > { %2298 = vtanh.f32 %v1679_v1  ;;  %v1681_v14 = vmul.f32 0.5, %v1670_v11  ;;  %v1672_v39 = vpop.f32.mrb[15].mxu1 }
 0x39e   : > { %2300 = vtanh.f32 %v1680_v62  ;;  %v1682_v27 = vmul.f32 0.5, %v1672_v39 }
 0x39f   : > { %v2291_v28 = vpop.eup %2290  ;;  %2302 = vtanh.f32 %v1681_v14 }
 0x3a0   : > { %v2293_v49 = vpop.eup %2292  ;;  %v1691_v29 = vadd.f32 1.0, %v2291_v28  ;;  %2304 = vtanh.f32 %v1682_v27 }
 0x3a1   : > { %v2295_v5 = vpop.eup %2294  ;;  %v1692_v0 = vadd.f32 1.0, %v2293_v49 }
 0x3a2   : > { %v2297_v31 = vpop.eup %2296  ;;  %v1693_v33 = vadd.f32 1.0, %v2295_v5  ;;  %v1699_v35 = vmul.f32 %v1691_v29, %v1675_v18 }
 0x3a3   : > { %v1694_v19 = vadd.f32 1.0, %v2297_v31  ;;  %v1700_v44 = vmul.f32 %v1692_v0, %v1676_v10 }
 0x3a4   : > { %v1701_v37 = vmul.f32 %v1693_v33, %v1677_v22 }
 0x3a5   : > { %v1702_v40 = vmul.f32 %v1694_v19, %v1678_v20 }
 0x3a6   : > { %v1707_v50 = vpack.c.bf16 %v1701_v37, %v1699_v35 }
 0x3a7   : > { %v2299_v52 = vpop.eup %2298  ;;  %v1708_v16 = vpack.c.bf16 %v1702_v40, %v1700_v44  ;;  %v2240_v40 = vld [vmem:[%s3029_s7] sm:$0xff]  }
 0x3a8   : > { %v2301_v21 = vpop.eup %2300  ;;  %v1695_v24 = vadd.f32 1.0, %v2299_v52 }
 0x3a9   : > { %v2303_v25 = vpop.eup %2302  ;;  %v1696_v54 = vadd.f32 1.0, %v2301_v21  ;;  %1731 = vmatprep.subr.bf16.mxu1 %v1708_v16 }
 0x3aa   : > { %v2305_v43 = vpop.eup %2304  ;;  %v1697_v30 = vadd.f32 1.0, %v2303_v25  ;;  %1732 = vmatpush1.bf16.msra.mxu1 %v1707_v50  ;;  %v1703_v36 = vmul.f32 %v1695_v24, %v1679_v1  ;;  %v2241_v50 = vld [vmem:[%s3029_s7 + $0x8] sm:$0xff]  }
 0x3ab   : > { %v1698_v4 = vadd.f32 1.0, %v2305_v43  ;;  %v1704_v55 = vmul.f32 %v1696_v54, %v1680_v62 }
 0x3ac   : > { %v1705_v23 = vmul.f32 %v1697_v30, %v1681_v14 }
 0x3ad   : > { %v1706_v41 = vmul.f32 %v1698_v4, %v1682_v27 }
 0x3ae   : > { %v1709_v59 = vpack.c.bf16 %v1705_v23, %v1703_v36 }
 0x3af   : > { %v1710_v61 = vpack.c.bf16 %v1706_v41, %v1704_v55 }
 0x3b1   : > { %1733 = vmatprep.subr.bf16.mxu1 %v1710_v61 }
 0x3b2   : > { %1734 = vmatpush1.bf16.msra.mxu1 %v1709_v59 }
 0x3b5   : > { %2135 = vmatmul.mubr.msk.bf16.vlgmr.msra.gmra.mrb[16].mxu1 %vm1506_vm11, %v2238_v26 }
 0x3b6   : > { %1773 = vmatprep.mubr.bf16.mxu1 %v2408_v3 }
 0x3bd   : > { %2136 = vmatmul.mubr.msk.bf16.gmra.mrb[20].mxu1 %vm1506_vm11, %v2239_v63 }
 0x3be   : > { %1965 = vmatprep.mubr.bf16.mxu1 %v2408_v3 }
 0x488   : > { %v1765_v34 = vpop.f32.mrb[16].mxu1 }
 0x489   : > { %v1784_v42 = vmul.f32 0.5, %v1765_v34  ;;  %v1767_v51 = vpop.f32.mrb[17].mxu1 }
 0x48a   : > { %v1785_v2 = vmul.f32 0.5, %v1767_v51  ;;  %v1769_v56 = vpop.f32.mrb[18].mxu1 }
 0x48b   : > { %2306 = vtanh.f32 %v1784_v42  ;;  %v1786_v53 = vmul.f32 0.5, %v1769_v56  ;;  %v1771_v58 = vpop.f32.mrb[19].mxu1 }
 0x48c   : > { %2308 = vtanh.f32 %v1785_v2  ;;  %v1787_v6 = vmul.f32 0.5, %v1771_v58 }
 0x48d   : > { %2310 = vtanh.f32 %v1786_v53 }
 0x48e   : > { %2312 = vtanh.f32 %v1787_v6 }
 0x490   : > { %v1775_v60 = vpop.f32.mrb[20].mxu1 }
 0x491   : > { %v1788_v32 = vmul.f32 0.5, %v1775_v60  ;;  %v1777_v8 = vpop.f32.mrb[21].mxu1 }
 0x492   : > { %v1789_v9 = vmul.f32 0.5, %v1777_v8  ;;  %v1779_v46 = vpop.f32.mrb[22].mxu1 }
 0x493   : > { %2314 = vtanh.f32 %v1788_v32  ;;  %v1790_v13 = vmul.f32 0.5, %v1779_v46  ;;  %v1781_v57 = vpop.f32.mrb[23].mxu1 }
 0x494   : > { %2316 = vtanh.f32 %v1789_v9  ;;  %v1791_v45 = vmul.f32 0.5, %v1781_v57 }
 0x495   : > { %v2307_v48 = vpop.eup %2306  ;;  %2318 = vtanh.f32 %v1790_v13 }
 0x496   : > { %v2309_v7 = vpop.eup %2308  ;;  %v1800_v18 = vadd.f32 1.0, %v2307_v48  ;;  %2320 = vtanh.f32 %v1791_v45 }
 0x497   : > { %v2311_v15 = vpop.eup %2310  ;;  %v1801_v10 = vadd.f32 1.0, %v2309_v7 }
 0x498   : > { %v2313_v12 = vpop.eup %2312  ;;  %v1802_v22 = vadd.f32 1.0, %v2311_v15  ;;  %v1808_v20 = vmul.f32 %v1800_v18, %v1784_v42 }
 0x499   : > { %v1803_v17 = vadd.f32 1.0, %v2313_v12  ;;  %v1809_v1 = vmul.f32 %v1801_v10, %v1785_v2 }
 0x49a   : > { %v1810_v47 = vmul.f32 %v1802_v22, %v1786_v53 }
 0x49b   : > { %v1811_v38 = vmul.f32 %v1803_v17, %v1787_v6 }
 0x49c   : > { %v1816_v62 = vpack.c.bf16 %v1810_v47, %v1808_v20 }
 0x49d   : > { %v2315_v11 = vpop.eup %2314  ;;  %v1817_v14 = vpack.c.bf16 %v1811_v38, %v1809_v1  ;;  %v1929_v1 = vld [vmem:[%s3030_s8] sm:$0x1]  ;;  %v2409_v38 = vmov 1966171168  }
 0x49e   : > { %v2317_v39 = vpop.eup %2316  ;;  %v1804_v27 = vadd.f32 1.0, %v2315_v11  ;;  %v1980_v11 = vlaneseq }
 0x49f   : > { %v2319_v28 = vpop.eup %2318  ;;  %v1805_v49 = vadd.f32 1.0, %v2317_v39  ;;  %1840 = vmatprep.subr.bf16.mxu0 %v1817_v14 }
 0x4a0   : > { %v2321_v29 = vpop.eup %2320  ;;  %v1806_v5 = vadd.f32 1.0, %v2319_v28  ;;  %1841 = vmatpush1.bf16.msra.mxu0 %v1816_v62  ;;  %v1812_v31 = vmul.f32 %v1804_v27, %v1788_v32  ;;  %v1978_v62 = vunpack.c.l.s4 %v2409_v38  ;;  %v1981_v39 = vshrl.u32 %v1980_v11, 7 }
 0x4a1   : > { %v1807_v0 = vadd.f32 1.0, %v2321_v29  ;;  %v1813_v19 = vmul.f32 %v1805_v49, %v1789_v9  ;;  %vm1994_vm10 = vcmp.lt.s32.totalorder %v1980_v11, 256 }
 0x4a2   : > { %v1814_v33 = vmul.f32 %v1806_v5, %v1790_v13  ;;  %v1979_v14 = vunpack.c.0.s8 %v1978_v62 }
 0x4a3   : > { %v1815_v35 = vmul.f32 %v1807_v0, %v1791_v45 }
 0x4a4   : > { %v1818_v37 = vpack.c.bf16 %v1814_v33, %v1812_v31  ;;  %v1982_v28 = vsub.s32 %v1979_v14, %v1981_v39 }
 0x4a5   : > { %v1819_v44 = vpack.c.bf16 %v1815_v35, %v1813_v19 }
 0x4a7   : > { %1842 = vmatprep.subr.bf16.mxu0 %v1819_v44 }
 0x4a8   : > { %1843 = vmatpush1.bf16.msra.mxu0 %v1818_v37 }
 0x4ab   : > { %2139 = vmatmul.mubr.msk.bf16.vlgmr.msra.gmra.mrb[8].mxu0 %vm1506_vm11, %v2240_v40 }
 0x4ac   : > { %1882 = vmatprep.mubr.bf16.mxu0 %v2408_v3 }
 0x4b3   : > { %2140 = vmatmul.mubr.msk.bf16.gmra.mrb[12].mxu0 %vm1506_vm11, %v2241_v50 }
 0x57e   : > { %v1874_v52 = vpop.f32.mrb[8].mxu0 }
 0x57f   : > { %v1893_v16 = vmul.f32 0.5, %v1874_v52  ;;  %v1876_v21 = vpop.f32.mrb[9].mxu0 }
 0x580   : > { %v1894_v24 = vmul.f32 0.5, %v1876_v21  ;;  %v1878_v25 = vpop.f32.mrb[10].mxu0 }
 0x581   : > { %2322 = vtanh.f32 %v1893_v16  ;;  %v1895_v54 = vmul.f32 0.5, %v1878_v25  ;;  %v1880_v43 = vpop.f32.mrb[11].mxu0 }
 0x582   : > { %2324 = vtanh.f32 %v1894_v24  ;;  %v1896_v30 = vmul.f32 0.5, %v1880_v43 }
 0x583   : > { %2326 = vtanh.f32 %v1895_v54 }
 0x584   : > { %2328 = vtanh.f32 %v1896_v30 }
 0x586   : > { %v1884_v4 = vpop.f32.mrb[12].mxu0 }
 0x587   : > { %v1897_v3 = vmul.f32 0.5, %v1884_v4  ;;  %v1886_v36 = vpop.f32.mrb[13].mxu0 }
 0x588   : > { %v1898_v23 = vmul.f32 0.5, %v1886_v36  ;;  %v1888_v55 = vpop.f32.mrb[14].mxu0 }
 0x589   : > { %2330 = vtanh.f32 %v1897_v3  ;;  %v1899_v41 = vmul.f32 0.5, %v1888_v55  ;;  %v1890_v59 = vpop.f32.mrb[15].mxu0 }
 0x58a   : > { %2332 = vtanh.f32 %v1898_v23  ;;  %v1900_v61 = vmul.f32 0.5, %v1890_v59 }
 0x58b   : > { %v2323_v26 = vpop.eup %2322  ;;  %2334 = vtanh.f32 %v1899_v41 }
 0x58c   : > { %v2325_v63 = vpop.eup %2324  ;;  %v1909_v34 = vadd.f32 1.0, %v2323_v26  ;;  %2336 = vtanh.f32 %v1900_v61 }
 0x58d   : > { %v2327_v42 = vpop.eup %2326  ;;  %v1910_v51 = vadd.f32 1.0, %v2325_v63 }
 0x58e   : > { %v2329_v2 = vpop.eup %2328  ;;  %v1911_v56 = vadd.f32 1.0, %v2327_v42  ;;  %v1917_v58 = vmul.f32 %v1909_v34, %v1893_v16 }
 0x58f   : > { %v1912_v53 = vadd.f32 1.0, %v2329_v2  ;;  %v1918_v60 = vmul.f32 %v1910_v51, %v1894_v24 }
 0x590   : > { %v1919_v6 = vmul.f32 %v1911_v56, %v1895_v54 }
 0x591   : > { %v1920_v32 = vmul.f32 %v1912_v53, %v1896_v30 }
 0x592   : > { %v1925_v8 = vpack.c.bf16 %v1919_v6, %v1917_v58 }
 0x593   : > { %v2331_v9 = vpop.eup %2330  ;;  %v1926_v46 = vpack.c.bf16 %v1920_v32, %v1918_v60 }
 0x594   : > { %v2333_v13 = vpop.eup %2332  ;;  %v1913_v57 = vadd.f32 1.0, %v2331_v9 }
 0x595   : > { %v2335_v45 = vpop.eup %2334  ;;  %v1914_v48 = vadd.f32 1.0, %v2333_v13  ;;  %1933 = vmatprep.subr.bf16.mxu1 %v1926_v46 }
 0x596   : > { %v2337_v7 = vpop.eup %2336  ;;  %v1915_v18 = vadd.f32 1.0, %v2335_v45  ;;  %1934 = vmatpush1.bf16.msra.mxu1 %v1925_v8  ;;  %v1921_v10 = vmul.f32 %v1913_v57, %v1897_v3 }
 0x597   : > { %v1916_v15 = vadd.f32 1.0, %v2337_v7  ;;  %v1922_v22 = vmul.f32 %v1914_v48, %v1898_v23 }
 0x598   : > { %v1923_v12 = vmul.f32 %v1915_v18, %v1899_v41 }
 0x599   : > { %v1924_v17 = vmul.f32 %v1916_v15, %v1900_v61 }
 0x59a   : > { %v1927_v20 = vpack.c.bf16 %v1923_v12, %v1921_v10 }
 0x59b   : > { %v1928_v47 = vpack.c.bf16 %v1924_v17, %v1922_v22 }
 0x59d   : > { %1935 = vmatprep.subr.bf16.mxu1 %v1928_v47 }
 0x59e   : > { %1936 = vmatpush1.bf16.msra.mxu1 %v1927_v20 }
 0x5a1   : > { %2141 = vmatmul.mubr.msk.bf16.vlgmr.msra.gmra.mrb[24].mxu1 %vm1506_vm11, %v1929_v1 }
 0x674   : > { %v1967_v27 = vpop.f32.mrb[24].mxu1 }
 0x675   : > { %v1969_v49 = vpop.f32.mrb[25].mxu1 }
 0x676   : > { %v1976_v29 = vcombine.low %v1967_v27, %v1969_v49  ;;  %v1971_v5 = vpop.f32.mrb[26].mxu1 }
 0x677   : > { %v1972_v0 = vpop.f32.mrb[27].mxu1 }
 0x678   : > { %v1983_v31 = vrot.slane %v1976_v29, %v1982_v28 }
 0x67a   : > { %v1990_v33 = vrot.slane %v1983_v31, %v1982_v28 }
 0x67c   : > { %1996 = vst.msk [vmem:[%s326_s23] sm:$0x3] %vm1994_vm10, %v1990_v33 }
 0x67d   : > { %2351 = shalt.err (!%p2348_p3)
}
 0x67e   : > { %s2352_s17 = scalar_lea.hbm %s2980_s27, 32  ;;  %s2356_s23 = scalar_lea.hbm %s3031_s9, 64 }
 0x67f   : > { %p2353_p4 = scmp.ne.s32.totalorder %s2980_s27, %s2352_s17  ;;  %p2357_p9 = scmp.lt.u32.totalorder %s2980_s27, %s3031_s9 }
 0x680   : > { %p2358_p10 = scmp.lt.u32.totalorder %s2356_s23, %s2352_s17  ;;  %p2360_p12 = scmp.lt.u32.totalorder %s2352_s17, %s2980_s27 }
 0x681   : > { %p2354_p7 = pnand %p2353_p4, %p2499_p5 }
 0x682   : > { %p2359_p11 = por %p2358_p10, %p2357_p9 }
 0x683   : > { %p2355_p8 = pneg %p2354_p7 }
 0x684   : > { %p2361_p13 = por %p2360_p12, %p2359_p11 }
 0x686   : > { %p2362_p0 = pnand %p2361_p13, %p2355_p8 }
 0x688   : > { %2365 = shalt.err (!%p2362_p0)
}
 0x689   : > { %2180 = dma.vmem_to_hbm [thread:$0]  (%p2499_p5), %s2982_s24, 32, %s2980_s27, %s1998_s28  }
 0x68a PF: > { %p2186_p1 = scmp.ge.s32.totalorder %s2400_s12, 2  ;;  %s2024_s29 = sand.u32 1, %s2388_s30  }
 0x68b   : > { %s2025_s13 = scalar_lea.sflag [#allocation3], %s2024_s29 }
 0x68c   : > { %p2183_p2 = pnand %p2186_p1, %p2503_p6 }
 0x68e   : > { %2383 = dma.done.wait (!%p2183_p2), %s2025_s13, 32  }
 0x68f   : > { %2385 = vsyncadd (!%p2183_p2), %s2025_s13, 4294967264  ;;  %p19_p3 = scmp.ge.s32.totalorder %s2486_s15, 4   ;;  %s3040_s30 = smov %s2392_s10 }
 0x690   : > { %s3041_s10 = smov %s2396_s11  ;;  %s3042_s11 = smov %s2497_s18 }
 0x691   : > { %s3043_s12 = smov %s2486_s15  ;;  %21 = sbr.rel (!%p19_p3) target bundleno = 3 (0x3), region = 91 }
 0x698   :  { %2030 = vsyncpa [#allocation3], 1 }
 0x699   :  { %2032 = vsyncpa [#allocation3 + $0x1], 1 }

</bundles_post_ra>
